<compile_context>
chip_gen: v7x
topology: tpu7x:2x2x1
jax: 0.10.0
libtpu: 0.0.40
codegen_flags: <defaults>
</compile_context>

<pallas_src>
import numpy as np
import jax
import jax.numpy as jnp
from jax.experimental import pallas as pl
from jax.experimental.pallas import tpu as pltpu


MASK_NEG = -1e12   # additive mask bias; safe in f32/bf16 (would overflow fp16)


def _align8(x):
    return ((x + 7) // 8) * 8


# --------------------------------------------------------------------------- layout
def _const_layout(H, B, F, L):
    """Static row layout of the single packed weight/constant slab.

    Every operand lives at a sublane-aligned static row offset with its natural
    column width; in-kernel access is a free static ref slice."""
    entries = [
        # name         rows     cols
        ("wq_e",       H,       H),
        ("wq_f",       H,       H),
        ("af_q",       H,       H),
        ("af_m",       H,       H),
        ("a_q",        H,       H),
        ("a_m",        H,       H),
        ("cat_h",      H,       H),
        ("cat_c",      H,       H),
        ("gc_e",       H,       2 * H),
        ("gc_f",       H,       2 * H),
        ("gc_c",       H,       2 * H),
        ("fcg_f",      H,       2 * H),
        ("fcg_h",      H,       2 * H),
        ("g0_ih_h",    H,       3 * H),
        ("g0_ih_c",    H,       3 * H),
        ("g0_hh",      H,       3 * H),
        ("g1_ih",      H,       3 * H),
        ("g1_hh",      H,       3 * H),
        ("af_s",       H,       1),        # score columns -> MXU (H,1) matmuls
        ("a_s",        H,       1),
        ("wq_b",       1,       H),
        ("af_b",       1,       H),
        ("a_b",        1,       H),
        ("cat_b",      1,       H),
        ("gc_b",       1,       2 * H),
        ("fcg_b",      1,       2 * H),
        ("g0_bi",      1,       3 * H),
        ("g0_bh",      1,       3 * H),
        ("g1_bi",      1,       3 * H),
        ("g1_bh",      1,       3 * H),
        ("s_f",        B,       F * B),    # group-sum selection (B, F*B)
        ("s_l",        B,       L * B),    # group-sum selection (B, L*B)
        ("r_f",        F * B,   B),        # replication matrix  (F*B, B)
        ("r_l",        L * B,   B),        # replication matrix  (L*B, B)
    ]
    layout = {}
    r = 0
    for name, rows, cols in entries:
        layout[name] = (r, rows, cols)
        r = _align8(r + rows)              # keep every block sublane-aligned
    total_rows = _align8(r)
    wpad = ((max(3 * H, F * B, L * B) + 127) // 128) * 128   # lane-dense slab width
    return layout, total_rows, wpad


# --------------------------------------------------------------------------- one-time prep
def prepare_params(params, H, B, F, L):
    """One-time host-side packing of all Decoder weights, biases, score columns and
    the replication / group-sum constants into ONE lane-dense f32 slab.  The
    per-token decode path never repeats this work."""
    layout, total_rows, wpad = _const_layout(H, B, F, L)
    p = {k: np.asarray(v, np.float32) for k, v in params.items()}

    def pack_gru(wih, whh, bih, bhh):
        return (np.concatenate([wih[0], wih[1], wih[2]], axis=1),   # (in, 3H)
                np.concatenate([whh[0], whh[1], whh[2]], axis=1),   # (H, 3H)
                np.concatenate([bih[0], bih[1], bih[2]], axis=1),   # (1, 3H)
                np.concatenate([bhh[0], bhh[1], bhh[2]], axis=1))

    gc_w = np.concatenate([p['wg_w'], p['wc_w']], axis=1)           # (3H, 2H)
    fcg_w = np.concatenate([p['wfc_w'], p['wfg_w']], axis=1)        # (2H, 2H)
    g0_ih, g0_hh, g0_bi, g0_bh = pack_gru(p['gru0_wih'], p['gru0_whh'],
                                          p['gru0_bih'], p['gru0_bhh'])
    g1_ih, g1_hh, g1_bi, g1_bh = pack_gru(p['gru1_wih'], p['gru1_whh'],
                                          p['gru1_bih'], p['gru1_bhh'])
    eye_b = np.eye(B, dtype=np.float32)

    pieces = {
        'wq_e': p['wq_w'][:H],       'wq_f': p['wq_w'][H:],
        'af_q': p['af_attn_w'][:H],  'af_m': p['af_attn_w'][H:],
        'a_q':  p['a_attn_w'][:H],   'a_m':  p['a_attn_w'][H:],
        'cat_h': p['concat_w'][:H],  'cat_c': p['concat_w'][H:],
        'gc_e': gc_w[:H], 'gc_f': gc_w[H:2 * H], 'gc_c': gc_w[2 * H:],
        'fcg_f': fcg_w[:H], 'fcg_h': fcg_w[H:],
        'g0_ih_h': g0_ih[:H], 'g0_ih_c': g0_ih[H:], 'g0_hh': g0_hh,
        'g1_ih': g1_ih, 'g1_hh': g1_hh,
        'af_s': p['af_score_w'].T, 'a_s': p['a_score_w'].T,          # (H, 1)
        'wq_b': p['wq_b'], 'af_b': p['af_attn_b'], 'a_b': p['a_attn_b'],
        'cat_b': p['concat_b'],
        'gc_b': np.concatenate([p['wg_b'], p['wc_b']], axis=1),
        'fcg_b': np.concatenate([p['wfc_b'], p['wfg_b']], axis=1),
        'g0_bi': g0_bi, 'g0_bh': g0_bh, 'g1_bi': g1_bi, 'g1_bh': g1_bh,
        's_f': np.tile(eye_b, (1, F)), 's_l': np.tile(eye_b, (1, L)),
        'r_f': np.tile(eye_b, (F, 1)), 'r_l': np.tile(eye_b, (L, 1)),
    }

    slab = np.zeros((total_rows, wpad), np.float32)
    for name, (r0, rows, cols) in layout.items():
        slab[r0:r0 + rows, :cols] = pieces[name].reshape(rows, cols)
    return jnp.asarray(slab)


# --------------------------------------------------------------------------- kernel
def _make_decoder_kernel(layout, H, B, F, L):
    FB, LB = F * B, L * B
    # Activation-slab row offsets (wrapper packs [emb | feed | enc | mask]).
    EMB0, FEED0 = 0, B
    ENC0 = FEED0 + FB
    MASK0 = ENC0 + LB
    # Output-slab row offsets ([out | h0 | h1 | new_feed(F rows) | new_hidden]).
    OUT0, HID0, NEWFEED0 = 0, B, 3 * B

    def kernel(act_ref, w_ref, out_ref):
        f32 = jnp.float32

        def W(name):                       # static slice of the const slab (free view)
            r0, rows, cols = layout[name]
            return w_ref[r0:r0 + rows, 0:cols]

        def dot(a, b):
            return jnp.dot(a, b, preferred_element_type=f32)

        emb = act_ref[EMB0:EMB0 + B, :]                           # (B, H)
        feed2 = act_ref[FEED0:FEED0 + FB, :]                      # (F*B, H) f-major
        feed_last = act_ref[FEED0 + (F - 1) * B:FEED0 + FB, :]    # (B, H)
        enc2 = act_ref[ENC0:ENC0 + LB, :]                         # (L*B, H) l-major
        mask_bias = act_ref[MASK0:MASK0 + LB, 0:1]                # (L*B, 1)

        S_F, S_L = W('s_f'), W('s_l')                             # group-sum matrices
        R_F, R_L = W('r_f'), W('r_l')                             # replication matrices

        # query = tanh(w_q([emb ; feed_last]))  (split weights, no lane concat)
        query = jnp.tanh(dot(emb, W('wq_e')) + dot(feed_last, W('wq_f')) + W('wq_b'))

        # ---- attention over feed_hidden (no mask) ---------------------------------
        qf = dot(query, W('af_q'))                                # (B, H)
        hh_f = jnp.tanh(dot(R_F, qf) + dot(feed2, W('af_m')) + W('af_b'))
        e_f = dot(hh_f, W('af_s'))                                # (F*B, 1) score on MXU
        # Single shared max (softmax is invariant to any common constant).
        p_f = jnp.exp(e_f - jnp.max(e_f, axis=0, keepdims=True))
        den_f = dot(S_F, p_f)                                     # (B, 1) on MXU
        ctx_feed = dot(S_F, p_f * feed2) * pl.reciprocal(den_f, approx=False)

        # ---- gated new hidden: w_g | w_c fused ------------------------------------
        gc = (dot(emb, W('gc_e')) + dot(feed_last, W('gc_f'))
              + dot(ctx_feed, W('gc_c')) + W('gc_b'))             # (B, 2H)
        new_hidden = jax.nn.sigmoid(gc[:, :H]) * jnp.tanh(gc[:, H:])

        # ---- feed-hidden update: w_f_c | w_f_g fused, all F rows in one matmul ----
        fcg = (dot(feed2, W('fcg_f')) + dot(R_F, dot(new_hidden, W('fcg_h')))
               + W('fcg_b'))                                      # (F*B, 2H)
        out_ref[NEWFEED0:NEWFEED0 + FB, :] = jnp.tanh(fcg[:, :H]) * jax.nn.sigmoid(fcg[:, H:])
        out_ref[NEWFEED0 + FB:NEWFEED0 + FB + B, :] = new_hidden

        # ---- attention over encoder outputs (additive -1e12 mask bias) -------------
        qe = dot(new_hidden, W('a_q'))
        hh_e = jnp.tanh(dot(R_L, qe) + dot(enc2, W('a_m')) + W('a_b'))
        e_e = dot(hh_e, W('a_s')) + mask_bias                     # (L*B, 1)
        p_e = jnp.exp(e_e - jnp.max(e_e, axis=0, keepdims=True))
        den_e = dot(S_L, p_e)
        ctx = dot(S_L, p_e * enc2) * pl.reciprocal(den_e, approx=False)

        # ---- 2-layer GRU, single step (gates fused to (., 3H) matmuls) -------------
        def gru(gi, gh, h):
            r = jax.nn.sigmoid(gi[:, :H] + gh[:, :H])
            z = jax.nn.sigmoid(gi[:, H:2 * H] + gh[:, H:2 * H])
            n = jnp.tanh(gi[:, 2 * H:] + r * gh[:, 2 * H:])
            return (1.0 - z) * n + z * h

        gi0 = dot(new_hidden, W('g0_ih_h')) + dot(ctx, W('g0_ih_c')) + W('g0_bi')
        gh0 = dot(new_hidden, W('g0_hh')) + W('g0_bh')
        h0 = gru(gi0, gh0, new_hidden)
        # TODO(synk): GRU inter-layer dropout skipped (eval-mode identity).
        gi1 = dot(h0, W('g1_ih')) + W('g1_bi')
        gh1 = dot(new_hidden, W('g1_hh')) + W('g1_bh')
        h1 = gru(gi1, gh1, new_hidden)
        out_ref[HID0:HID0 + B, :] = h0
        out_ref[HID0 + B:HID0 + 2 * B, :] = h1

        # ---- output projection (concat-free) ---------------------------------------
        out_ref[OUT0:OUT0 + B, :] = jnp.tanh(dot(h1, W('cat_h')) + dot(ctx, W('cat_c'))
                                             + W('cat_b'))

    return kernel


# --------------------------------------------------------------------------- wrapper
def make_decoder_forward(H, B, F, L):
    """Builds the jitted per-token forward.  All weight packing lives in
    prepare_params(); the per-call path only gathers the embedding row, packs the
    tiny activation slab and launches a single gridless pallas_call."""
    layout, _, _ = _const_layout(H, B, F, L)
    kernel = _make_decoder_kernel(layout, H, B, F, L)
    n_out_rows = (1 + 2 + F + 1) * B
    vspec = pl.BlockSpec(memory_space=pltpu.MemorySpace.VMEM)

    @jax.jit
    def forward(const_slab, input_ids, last_hidden, feed_hidden,
                word_dict_vec, encoder_outputs, seq_mask):
        del last_hidden                       # unused by the PyTorch forward as well
        f32 = jnp.float32
        # Embedding: row gather (== one-hot bmm); the (B, V, H) table never enters VMEM.
        # TODO(synk): nn.Dropout on the embedding skipped (eval-mode identity).
        emb = word_dict_vec[jnp.arange(B), input_ids].astype(f32)          # (B, H)
        feed2 = feed_hidden.reshape(F * B, H).astype(f32)                  # free reshape
        enc2 = encoder_outputs.reshape(L * B, H).astype(f32)               # free reshape
        mask_blk = jnp.broadcast_to(
            (seq_mask.astype(f32) * MASK_NEG).T.reshape(L * B, 1), (L * B, H))
        act = jnp.concatenate([emb, feed2, enc2, mask_blk], axis=0)        # one DMA slab

        # TODO(synk): for beam-parallel decode (large B) add a batch grid axis with
        # dimension_semantics=("parallel",) so both v7x TensorCores are used; at B=2
        # the single gridless invocation is the right shape.
        res = pl.pallas_call(
            kernel,
            out_shape=jax.ShapeDtypeStruct((n_out_rows, H), f32),
            in_specs=[vspec, vspec],
            out_specs=vspec,
        )(act, const_slab)

        out = res[:B]
        hidden = res[B:3 * B].reshape(2, B, H)
        new_feed = res[3 * B:].reshape(F + 1, B, H)
        return out, hidden, new_feed

    return forward


# --------------------------------------------------------------------------- pure-JAX reference
def decoder_reference(params, input_ids, feed_hidden, wdv, enc, seq_mask):
    oh = jax.nn.one_hot(input_ids, wdv.shape[1], dtype=jnp.float32)
    last_emb = jnp.einsum('bv,bvh->bh', oh, wdv)
    feed_last = feed_hidden[-1]
    query = jnp.tanh(
        jnp.concatenate([last_emb, feed_last], -1) @ params['wq_w'] + params['wq_b'])

    def attn(hidden_bh, outputs_lbh, aw, ab, sw, mask=None):
        rep = jnp.broadcast_to(hidden_bh[None], outputs_lbh.shape)
        ein = jnp.concatenate([rep, outputs_lbh], -1)                  # (L,B,2H)
        hh = jnp.tanh(jnp.einsum('lbi,io->lbo', ein, aw) + ab)
        e = jnp.einsum('lbo,o->lb', hh, sw[0]).T                       # (B,L)
        if mask is not None:
            e = jnp.where(mask, -1e12, e)
        return jax.nn.softmax(e, axis=1)

    aw_feed = attn(query, feed_hidden,
                   params['af_attn_w'], params['af_attn_b'], params['af_score_w'])
    ctx_feed = jnp.einsum('bl,lbh->bh', aw_feed, feed_hidden)
    cat3 = jnp.concatenate([last_emb, feed_last, ctx_feed], -1)
    g = jax.nn.sigmoid(cat3 @ params['wg_w'] + params['wg_b'])
    c = jnp.tanh(cat3 @ params['wc_w'] + params['wc_b'])
    new_hidden = g * c
    fin = jnp.concatenate(
        [feed_hidden, jnp.broadcast_to(new_hidden[None], feed_hidden.shape)], -1)
    t = jnp.tanh(jnp.einsum('fbi,io->fbo', fin, params['wfc_w']) + params['wfc_b']) * \
        jax.nn.sigmoid(jnp.einsum('fbi,io->fbo', fin, params['wfg_w']) + params['wfg_b'])
    new_feed = jnp.concatenate([t, new_hidden[None]], axis=0)

    aw_enc = attn(new_hidden, enc,
                  params['a_attn_w'], params['a_attn_b'], params['a_score_w'],
                  mask=seq_mask)
    ctx = jnp.einsum('bl,lbh->bh', aw_enc, enc)

    def gru_cell(x, h, wih, whh, bih, bhh):
        gi = [x @ wih[i] + bih[i] for i in range(3)]
        gh = [h @ whh[i] + bhh[i] for i in range(3)]
        r = jax.nn.sigmoid(gi[0] + gh[0])
        z = jax.nn.sigmoid(gi[1] + gh[1])
        n = jnp.tanh(gi[2] + r * gh[2])
        return (1.0 - z) * n + z * h

    x0 = jnp.concatenate([new_hidden, ctx], -1)
    h0 = gru_cell(x0, new_hidden, params['gru0_wih'], params['gru0_whh'],
                  params['gru0_bih'], params['gru0_bhh'])
    h1 = gru_cell(h0, new_hidden, params['gru1_wih'], params['gru1_whh'],
                  params['gru1_bih'], params['gru1_bhh'])
    hidden = jnp.stack([h0, h1], axis=0)
    out = jnp.tanh(jnp.concatenate([h1, ctx], -1) @ params['concat_w'] + params['concat_b'])
    return out, hidden, new_feed


# --------------------------------------------------------------------------- params
def init_params(key, H):
    keys = list(jax.random.split(key, 20))

    def lin(k, fan_in, fan_out):
        k1, k2 = jax.random.split(k)
        b = 1.0 / jnp.sqrt(float(fan_in))
        return (jax.random.uniform(k1, (fan_in, fan_out), jnp.float32, -b, b),
                jax.random.uniform(k2, (1, fan_out), jnp.float32, -b, b))

    def gru_layer(k, in_dim):
        k1, k2, k3, k4 = jax.random.split(k, 4)
        b = 1.0 / jnp.sqrt(float(H))
        return (jax.random.uniform(k1, (3, in_dim, H), jnp.float32, -b, b),
                jax.random.uniform(k2, (3, H, H), jnp.float32, -b, b),
                jax.random.uniform(k3, (3, 1, H), jnp.float32, -b, b),
                jax.random.uniform(k4, (3, 1, H), jnp.float32, -b, b))

    p = {}
    p['wq_w'], p['wq_b'] = lin(keys[0], 2 * H, H)
    p['af_attn_w'], p['af_attn_b'] = lin(keys[1], 2 * H, H)
    p['af_score_w'] = jax.random.uniform(keys[2], (1, H), jnp.float32,
                                         -1.0 / jnp.sqrt(float(H)), 1.0 / jnp.sqrt(float(H)))
    p['wg_w'], p['wg_b'] = lin(keys[3], 3 * H, H)
    p['wc_w'], p['wc_b'] = lin(keys[4], 3 * H, H)
    p['wfc_w'], p['wfc_b'] = lin(keys[5], 2 * H, H)
    p['wfg_w'], p['wfg_b'] = lin(keys[6], 2 * H, H)
    p['a_attn_w'], p['a_attn_b'] = lin(keys[7], 2 * H, H)
    p['a_score_w'] = jax.random.uniform(keys[8], (1, H), jnp.float32,
                                        -1.0 / jnp.sqrt(float(H)), 1.0 / jnp.sqrt(float(H)))
    (p['gru0_wih'], p['gru0_whh'], p['gru0_bih'], p['gru0_bhh']) = gru_layer(keys[9], 2 * H)
    (p['gru1_wih'], p['gru1_whh'], p['gru1_bih'], p['gru1_bhh']) = gru_layer(keys[10], H)
    p['concat_w'], p['concat_b'] = lin(keys[11], 2 * H, H)
    return p


# --------------------------------------------------------------------------- main
if __name__ == "__main__":
    H, B, V, F, L = 32, 2, 16, 3, 8

    key = jax.random.PRNGKey(0)
    k_param, k_ids, k_feed, k_wdv, k_enc = jax.random.split(key, 5)

    params = init_params(k_param, H)
    input_ids = jax.random.randint(k_ids, (B,), 0, V, dtype=jnp.int32)
    feed_hidden = jax.random.normal(k_feed, (F, B, H), jnp.float32)
    word_dict_vec = jax.random.normal(k_wdv, (B, V, H), jnp.float32)
    encoder_outputs = jax.random.normal(k_enc, (L, B, H), jnp.float32)
    lengths = jnp.array([6, 4], dtype=jnp.int32)
    seq_mask = (jnp.arange(L)[None, :] >= lengths[:, None])            # (B, L) bool
    last_hidden = jnp.zeros((2, B, H), jnp.float32)                    # unused by forward

    const_slab = prepare_params(params, H, B, F, L)    # one-time weight packing
    decoder_forward = make_decoder_forward(H, B, F, L)

    out, hidden, new_feed = decoder_forward(
        const_slab, input_ids, last_hidden, feed_hidden,
        word_dict_vec, encoder_outputs, seq_mask)
    jax.block_until_ready((out, hidden, new_feed))

    ref_out, ref_hidden, ref_feed = decoder_reference(
        params, input_ids, feed_hidden, word_dict_vec, encoder_outputs, seq_mask)

    assert out.shape == (B, H) and hidden.shape == (2, B, H) and new_feed.shape == (F + 1, B, H)
    assert jnp.allclose(out, ref_out, rtol=1e-4, atol=1e-4)
    assert jnp.allclose(hidden, ref_hidden, rtol=1e-4, atol=1e-4)
    assert jnp.allclose(new_feed, ref_feed, rtol=1e-4, atol=1e-4)

    print("KERNEL_OK")
</pallas_src>

<mosaic_0001>
module attributes {stable_mosaic.version = 11 : i64} {
  func.func @kernel(%arg0: memref<40x32xf32, #tpu.memory_space<vmem>>, %arg1: memref<760x128xf32, #tpu.memory_space<vmem>>, %arg2: memref<14x32xf32, #tpu.memory_space<vmem>>) attributes {dimension_semantics = [], scalar_prefetch = 0 : i64, scratch_operands = 0 : i64, tpu.core_type = #tpu.core_type<tc>} {
    %c0 = arith.constant 0 : index
    %c0_0 = arith.constant 0 : index
    %0 = vector.load %arg0[%c0, %c0_0] : memref<40x32xf32, #tpu.memory_space<vmem>>, vector<2x32xf32>
    %c2 = arith.constant 2 : index
    %c0_1 = arith.constant 0 : index
    %1 = vector.load %arg0[%c2, %c0_1] : memref<40x32xf32, #tpu.memory_space<vmem>>, vector<6x32xf32>
    %c6 = arith.constant 6 : index
    %c0_2 = arith.constant 0 : index
    %2 = vector.load %arg0[%c6, %c0_2] : memref<40x32xf32, #tpu.memory_space<vmem>>, vector<2x32xf32>
    %c8 = arith.constant 8 : index
    %c0_3 = arith.constant 0 : index
    %3 = vector.load %arg0[%c8, %c0_3] : memref<40x32xf32, #tpu.memory_space<vmem>>, vector<16x32xf32>
    %c24 = arith.constant 24 : index
    %c0_4 = arith.constant 0 : index
    %4 = vector.load %arg0[%c24, %c0_4] : memref<40x32xf32, #tpu.memory_space<vmem>>, vector<16x1xf32>
    %c720 = arith.constant 720 : index
    %c0_5 = arith.constant 0 : index
    %5 = vector.load %arg1[%c720, %c0_5] : memref<760x128xf32, #tpu.memory_space<vmem>>, vector<2x6xf32>
    %c728 = arith.constant 728 : index
    %c0_6 = arith.constant 0 : index
    %6 = vector.load %arg1[%c728, %c0_6] : memref<760x128xf32, #tpu.memory_space<vmem>>, vector<2x16xf32>
    %c736 = arith.constant 736 : index
    %c0_7 = arith.constant 0 : index
    %7 = vector.load %arg1[%c736, %c0_7] : memref<760x128xf32, #tpu.memory_space<vmem>>, vector<6x2xf32>
    %c744 = arith.constant 744 : index
    %c0_8 = arith.constant 0 : index
    %8 = vector.load %arg1[%c744, %c0_8] : memref<760x128xf32, #tpu.memory_space<vmem>>, vector<16x2xf32>
    %c0_9 = arith.constant 0 : index
    %c0_10 = arith.constant 0 : index
    %9 = vector.load %arg1[%c0_9, %c0_10] : memref<760x128xf32, #tpu.memory_space<vmem>>, vector<32x32xf32>
    %cst = arith.constant dense<0.000000e+00> : vector<2x32xf32>
    %10 = tpu.matmul %0, %9, %cst {dimension_numbers = #tpu.dot_dimension_numbers<[1], [0], [0], [1], [0, 0, 1, 1], [], []>} : vector<2x32xf32>, vector<32x32xf32>, vector<2x32xf32> -> vector<2x32xf32>
    %c32 = arith.constant 32 : index
    %c0_11 = arith.constant 0 : index
    %11 = vector.load %arg1[%c32, %c0_11] : memref<760x128xf32, #tpu.memory_space<vmem>>, vector<32x32xf32>
    %cst_12 = arith.constant dense<0.000000e+00> : vector<2x32xf32>
    %12 = tpu.matmul %2, %11, %cst_12 {dimension_numbers = #tpu.dot_dimension_numbers<[1], [0], [0], [1], [0, 0, 1, 1], [], []>} : vector<2x32xf32>, vector<32x32xf32>, vector<2x32xf32> -> vector<2x32xf32>
    %13 = arith.addf %10, %12 : vector<2x32xf32>
    %c640 = arith.constant 640 : index
    %c0_13 = arith.constant 0 : index
    %14 = vector.load %arg1[%c640, %c0_13] : memref<760x128xf32, #tpu.memory_space<vmem>>, vector<1x32xf32>
    %15 = vector.broadcast %14 : vector<1x32xf32> to vector<2x32xf32>
    %16 = arith.addf %13, %15 : vector<2x32xf32>
    %17 = math.tanh %16 : vector<2x32xf32>
    %c64 = arith.constant 64 : index
    %c0_14 = arith.constant 0 : index
    %18 = vector.load %arg1[%c64, %c0_14] : memref<760x128xf32, #tpu.memory_space<vmem>>, vector<32x32xf32>
    %cst_15 = arith.constant dense<0.000000e+00> : vector<2x32xf32>
    %19 = tpu.matmul %17, %18, %cst_15 {dimension_numbers = #tpu.dot_dimension_numbers<[1], [0], [0], [1], [0, 0, 1, 1], [], []>} : vector<2x32xf32>, vector<32x32xf32>, vector<2x32xf32> -> vector<2x32xf32>
    %cst_16 = arith.constant dense<0.000000e+00> : vector<6x32xf32>
    %20 = tpu.matmul %7, %19, %cst_16 {dimension_numbers = #tpu.dot_dimension_numbers<[1], [0], [0], [1], [0, 0, 1, 1], [], []>} : vector<6x2xf32>, vector<2x32xf32>, vector<6x32xf32> -> vector<6x32xf32>
    %c96 = arith.constant 96 : index
    %c0_17 = arith.constant 0 : index
    %21 = vector.load %arg1[%c96, %c0_17] : memref<760x128xf32, #tpu.memory_space<vmem>>, vector<32x32xf32>
    %cst_18 = arith.constant dense<0.000000e+00> : vector<6x32xf32>
    %22 = tpu.matmul %1, %21, %cst_18 {dimension_numbers = #tpu.dot_dimension_numbers<[1], [0], [0], [1], [0, 0, 1, 1], [], []>} : vector<6x32xf32>, vector<32x32xf32>, vector<6x32xf32> -> vector<6x32xf32>
    %23 = arith.addf %20, %22 : vector<6x32xf32>
    %c648 = arith.constant 648 : index
    %c0_19 = arith.constant 0 : index
    %24 = vector.load %arg1[%c648, %c0_19] : memref<760x128xf32, #tpu.memory_space<vmem>>, vector<1x32xf32>
    %25 = vector.broadcast %24 : vector<1x32xf32> to vector<6x32xf32>
    %26 = arith.addf %23, %25 : vector<6x32xf32>
    %27 = math.tanh %26 : vector<6x32xf32>
    %c576 = arith.constant 576 : index
    %c0_20 = arith.constant 0 : index
    %28 = vector.load %arg1[%c576, %c0_20] : memref<760x128xf32, #tpu.memory_space<vmem>>, vector<32x1xf32>
    %cst_21 = arith.constant dense<0.000000e+00> : vector<6x1xf32>
    %29 = tpu.matmul %27, %28, %cst_21 {dimension_numbers = #tpu.dot_dimension_numbers<[1], [0], [0], [1], [0, 0, 1, 1], [], []>} : vector<6x32xf32>, vector<32x1xf32>, vector<6x1xf32> -> vector<6x1xf32>
    %cst_22 = arith.constant dense<0xFF800000> : vector<1xf32>
    %30 = vector.multi_reduction <maximumf>, %29, %cst_22 [0] : vector<6x1xf32> to vector<1xf32>
    %31 = vector.shape_cast %30 : vector<1xf32> to vector<1x1xf32>
    %32 = vector.broadcast %31 : vector<1x1xf32> to vector<6x1xf32>
    %33 = arith.subf %29, %32 : vector<6x1xf32>
    %34 = math.exp %33 : vector<6x1xf32>
    %cst_23 = arith.constant dense<0.000000e+00> : vector<2x1xf32>
    %35 = tpu.matmul %5, %34, %cst_23 {dimension_numbers = #tpu.dot_dimension_numbers<[1], [0], [0], [1], [0, 0, 1, 1], [], []>} : vector<2x6xf32>, vector<6x1xf32>, vector<2x1xf32> -> vector<2x1xf32>
    %36 = vector.broadcast %34 : vector<6x1xf32> to vector<6x32xf32>
    %37 = arith.mulf %36, %1 : vector<6x32xf32>
    %cst_24 = arith.constant dense<0.000000e+00> : vector<2x32xf32>
    %38 = tpu.matmul %5, %37, %cst_24 {dimension_numbers = #tpu.dot_dimension_numbers<[1], [0], [0], [1], [0, 0, 1, 1], [], []>} : vector<2x6xf32>, vector<6x32xf32>, vector<2x32xf32> -> vector<2x32xf32>
    %39 = tpu.reciprocal %35 : vector<2x1xf32> -> vector<2x1xf32>
    %40 = vector.broadcast %39 : vector<2x1xf32> to vector<2x32xf32>
    %41 = arith.mulf %38, %40 : vector<2x32xf32>
    %c256 = arith.constant 256 : index
    %c0_25 = arith.constant 0 : index
    %42 = vector.load %arg1[%c256, %c0_25] : memref<760x128xf32, #tpu.memory_space<vmem>>, vector<32x64xf32>
    %cst_26 = arith.constant dense<0.000000e+00> : vector<2x64xf32>
    %43 = tpu.matmul %0, %42, %cst_26 {dimension_numbers = #tpu.dot_dimension_numbers<[1], [0], [0], [1], [0, 0, 1, 1], [], []>} : vector<2x32xf32>, vector<32x64xf32>, vector<2x64xf32> -> vector<2x64xf32>
    %c288 = arith.constant 288 : index
    %c0_27 = arith.constant 0 : index
    %44 = vector.load %arg1[%c288, %c0_27] : memref<760x128xf32, #tpu.memory_space<vmem>>, vector<32x64xf32>
    %cst_28 = arith.constant dense<0.000000e+00> : vector<2x64xf32>
    %45 = tpu.matmul %2, %44, %cst_28 {dimension_numbers = #tpu.dot_dimension_numbers<[1], [0], [0], [1], [0, 0, 1, 1], [], []>} : vector<2x32xf32>, vector<32x64xf32>, vector<2x64xf32> -> vector<2x64xf32>
    %46 = arith.addf %43, %45 : vector<2x64xf32>
    %c320 = arith.constant 320 : index
    %c0_29 = arith.constant 0 : index
    %47 = vector.load %arg1[%c320, %c0_29] : memref<760x128xf32, #tpu.memory_space<vmem>>, vector<32x64xf32>
    %cst_30 = arith.constant dense<0.000000e+00> : vector<2x64xf32>
    %48 = tpu.matmul %41, %47, %cst_30 {dimension_numbers = #tpu.dot_dimension_numbers<[1], [0], [0], [1], [0, 0, 1, 1], [], []>} : vector<2x32xf32>, vector<32x64xf32>, vector<2x64xf32> -> vector<2x64xf32>
    %49 = arith.addf %46, %48 : vector<2x64xf32>
    %c672 = arith.constant 672 : index
    %c0_31 = arith.constant 0 : index
    %50 = vector.load %arg1[%c672, %c0_31] : memref<760x128xf32, #tpu.memory_space<vmem>>, vector<1x64xf32>
    %51 = vector.broadcast %50 : vector<1x64xf32> to vector<2x64xf32>
    %52 = arith.addf %49, %51 : vector<2x64xf32>
    %53 = vector.extract_strided_slice %52 {offsets = [0, 0], sizes = [2, 32], strides = [1, 1]} : vector<2x64xf32> to vector<2x32xf32>
    %54 = arith.negf %53 : vector<2x32xf32>
    %55 = math.exp %54 : vector<2x32xf32>
    %cst_32 = arith.constant 1.000000e+00 : f32
    %56 = vector.broadcast %cst_32 : f32 to vector<2x32xf32>
    %57 = arith.addf %56, %55 : vector<2x32xf32>
    %58 = arith.divf %56, %57 : vector<2x32xf32>
    %59 = vector.extract_strided_slice %52 {offsets = [0, 32], sizes = [2, 32], strides = [1, 1]} : vector<2x64xf32> to vector<2x32xf32>
    %60 = math.tanh %59 : vector<2x32xf32>
    %61 = arith.mulf %58, %60 : vector<2x32xf32>
    %c352 = arith.constant 352 : index
    %c0_33 = arith.constant 0 : index
    %62 = vector.load %arg1[%c352, %c0_33] : memref<760x128xf32, #tpu.memory_space<vmem>>, vector<32x64xf32>
    %cst_34 = arith.constant dense<0.000000e+00> : vector<6x64xf32>
    %63 = tpu.matmul %1, %62, %cst_34 {dimension_numbers = #tpu.dot_dimension_numbers<[1], [0], [0], [1], [0, 0, 1, 1], [], []>} : vector<6x32xf32>, vector<32x64xf32>, vector<6x64xf32> -> vector<6x64xf32>
    %c384 = arith.constant 384 : index
    %c0_35 = arith.constant 0 : index
    %64 = vector.load %arg1[%c384, %c0_35] : memref<760x128xf32, #tpu.memory_space<vmem>>, vector<32x64xf32>
    %cst_36 = arith.constant dense<0.000000e+00> : vector<2x64xf32>
    %65 = tpu.matmul %61, %64, %cst_36 {dimension_numbers = #tpu.dot_dimension_numbers<[1], [0], [0], [1], [0, 0, 1, 1], [], []>} : vector<2x32xf32>, vector<32x64xf32>, vector<2x64xf32> -> vector<2x64xf32>
    %cst_37 = arith.constant dense<0.000000e+00> : vector<6x64xf32>
    %66 = tpu.matmul %7, %65, %cst_37 {dimension_numbers = #tpu.dot_dimension_numbers<[1], [0], [0], [1], [0, 0, 1, 1], [], []>} : vector<6x2xf32>, vector<2x64xf32>, vector<6x64xf32> -> vector<6x64xf32>
    %67 = arith.addf %63, %66 : vector<6x64xf32>
    %c680 = arith.constant 680 : index
    %c0_38 = arith.constant 0 : index
    %68 = vector.load %arg1[%c680, %c0_38] : memref<760x128xf32, #tpu.memory_space<vmem>>, vector<1x64xf32>
    %69 = vector.broadcast %68 : vector<1x64xf32> to vector<6x64xf32>
    %70 = arith.addf %67, %69 : vector<6x64xf32>
    %71 = vector.extract_strided_slice %70 {offsets = [0, 0], sizes = [6, 32], strides = [1, 1]} : vector<6x64xf32> to vector<6x32xf32>
    %72 = math.tanh %71 : vector<6x32xf32>
    %73 = vector.extract_strided_slice %70 {offsets = [0, 32], sizes = [6, 32], strides = [1, 1]} : vector<6x64xf32> to vector<6x32xf32>
    %74 = arith.negf %73 : vector<6x32xf32>
    %75 = math.exp %74 : vector<6x32xf32>
    %cst_39 = arith.constant 1.000000e+00 : f32
    %76 = vector.broadcast %cst_39 : f32 to vector<6x32xf32>
    %77 = arith.addf %76, %75 : vector<6x32xf32>
    %78 = arith.divf %76, %77 : vector<6x32xf32>
    %79 = arith.mulf %72, %78 : vector<6x32xf32>
    %c6_40 = arith.constant 6 : index
    %c0_41 = arith.constant 0 : index
    %80 = vector.load %arg2[%c6_40, %c0_41] : memref<14x32xf32, #tpu.memory_space<vmem>>, vector<6x32xf32>
    tpu.vector_store %arg2[%c6_40, %c0_41], %79 {strides = array<i32>} : memref<14x32xf32, #tpu.memory_space<vmem>>, vector<6x32xf32>,
    %c12 = arith.constant 12 : index
    %c0_42 = arith.constant 0 : index
    %81 = vector.load %arg2[%c12, %c0_42] : memref<14x32xf32, #tpu.memory_space<vmem>>, vector<2x32xf32>
    tpu.vector_store %arg2[%c12, %c0_42], %61 {strides = array<i32>} : memref<14x32xf32, #tpu.memory_space<vmem>>, vector<2x32xf32>,
    %c128 = arith.constant 128 : index
    %c0_43 = arith.constant 0 : index
    %82 = vector.load %arg1[%c128, %c0_43] : memref<760x128xf32, #tpu.memory_space<vmem>>, vector<32x32xf32>
    %cst_44 = arith.constant dense<0.000000e+00> : vector<2x32xf32>
    %83 = tpu.matmul %61, %82, %cst_44 {dimension_numbers = #tpu.dot_dimension_numbers<[1], [0], [0], [1], [0, 0, 1, 1], [], []>} : vector<2x32xf32>, vector<32x32xf32>, vector<2x32xf32> -> vector<2x32xf32>
    %cst_45 = arith.constant dense<0.000000e+00> : vector<16x32xf32>
    %84 = tpu.matmul %8, %83, %cst_45 {dimension_numbers = #tpu.dot_dimension_numbers<[1], [0], [0], [1], [0, 0, 1, 1], [], []>} : vector<16x2xf32>, vector<2x32xf32>, vector<16x32xf32> -> vector<16x32xf32>
    %c160 = arith.constant 160 : index
    %c0_46 = arith.constant 0 : index
    %85 = vector.load %arg1[%c160, %c0_46] : memref<760x128xf32, #tpu.memory_space<vmem>>, vector<32x32xf32>
    %cst_47 = arith.constant dense<0.000000e+00> : vector<16x32xf32>
    %86 = tpu.matmul %3, %85, %cst_47 {dimension_numbers = #tpu.dot_dimension_numbers<[1], [0], [0], [1], [0, 0, 1, 1], [], []>} : vector<16x32xf32>, vector<32x32xf32>, vector<16x32xf32> -> vector<16x32xf32>
    %87 = arith.addf %84, %86 : vector<16x32xf32>
    %c656 = arith.constant 656 : index
    %c0_48 = arith.constant 0 : index
    %88 = vector.load %arg1[%c656, %c0_48] : memref<760x128xf32, #tpu.memory_space<vmem>>, vector<1x32xf32>
    %89 = vector.broadcast %88 : vector<1x32xf32> to vector<16x32xf32>
    %90 = arith.addf %87, %89 : vector<16x32xf32>
    %91 = math.tanh %90 : vector<16x32xf32>
    %c608 = arith.constant 608 : index
    %c0_49 = arith.constant 0 : index
    %92 = vector.load %arg1[%c608, %c0_49] : memref<760x128xf32, #tpu.memory_space<vmem>>, vector<32x1xf32>
    %cst_50 = arith.constant dense<0.000000e+00> : vector<16x1xf32>
    %93 = tpu.matmul %91, %92, %cst_50 {dimension_numbers = #tpu.dot_dimension_numbers<[1], [0], [0], [1], [0, 0, 1, 1], [], []>} : vector<16x32xf32>, vector<32x1xf32>, vector<16x1xf32> -> vector<16x1xf32>
    %94 = arith.addf %93, %4 : vector<16x1xf32>
    %cst_51 = arith.constant dense<0xFF800000> : vector<1xf32>
    %95 = vector.multi_reduction <maximumf>, %94, %cst_51 [0] : vector<16x1xf32> to vector<1xf32>
    %96 = vector.shape_cast %95 : vector<1xf32> to vector<1x1xf32>
    %97 = vector.broadcast %96 : vector<1x1xf32> to vector<16x1xf32>
    %98 = arith.subf %94, %97 : vector<16x1xf32>
    %99 = math.exp %98 : vector<16x1xf32>
    %cst_52 = arith.constant dense<0.000000e+00> : vector<2x1xf32>
    %100 = tpu.matmul %6, %99, %cst_52 {dimension_numbers = #tpu.dot_dimension_numbers<[1], [0], [0], [1], [0, 0, 1, 1], [], []>} : vector<2x16xf32>, vector<16x1xf32>, vector<2x1xf32> -> vector<2x1xf32>
    %101 = vector.broadcast %99 : vector<16x1xf32> to vector<16x32xf32>
    %102 = arith.mulf %101, %3 : vector<16x32xf32>
    %cst_53 = arith.constant dense<0.000000e+00> : vector<2x32xf32>
    %103 = tpu.matmul %6, %102, %cst_53 {dimension_numbers = #tpu.dot_dimension_numbers<[1], [0], [0], [1], [0, 0, 1, 1], [], []>} : vector<2x16xf32>, vector<16x32xf32>, vector<2x32xf32> -> vector<2x32xf32>
    %104 = tpu.reciprocal %100 : vector<2x1xf32> -> vector<2x1xf32>
    %105 = vector.broadcast %104 : vector<2x1xf32> to vector<2x32xf32>
    %106 = arith.mulf %103, %105 : vector<2x32xf32>
    %c416 = arith.constant 416 : index
    %c0_54 = arith.constant 0 : index
    %107 = vector.load %arg1[%c416, %c0_54] : memref<760x128xf32, #tpu.memory_space<vmem>>, vector<32x96xf32>
    %cst_55 = arith.constant dense<0.000000e+00> : vector<2x96xf32>
    %108 = tpu.matmul %61, %107, %cst_55 {dimension_numbers = #tpu.dot_dimension_numbers<[1], [0], [0], [1], [0, 0, 1, 1], [], []>} : vector<2x32xf32>, vector<32x96xf32>, vector<2x96xf32> -> vector<2x96xf32>
    %c448 = arith.constant 448 : index
    %c0_56 = arith.constant 0 : index
    %109 = vector.load %arg1[%c448, %c0_56] : memref<760x128xf32, #tpu.memory_space<vmem>>, vector<32x96xf32>
    %cst_57 = arith.constant dense<0.000000e+00> : vector<2x96xf32>
    %110 = tpu.matmul %106, %109, %cst_57 {dimension_numbers = #tpu.dot_dimension_numbers<[1], [0], [0], [1], [0, 0, 1, 1], [], []>} : vector<2x32xf32>, vector<32x96xf32>, vector<2x96xf32> -> vector<2x96xf32>
    %111 = arith.addf %108, %110 : vector<2x96xf32>
    %c688 = arith.constant 688 : index
    %c0_58 = arith.constant 0 : index
    %112 = vector.load %arg1[%c688, %c0_58] : memref<760x128xf32, #tpu.memory_space<vmem>>, vector<1x96xf32>
    %113 = vector.broadcast %112 : vector<1x96xf32> to vector<2x96xf32>
    %114 = arith.addf %111, %113 : vector<2x96xf32>
    %c480 = arith.constant 480 : index
    %c0_59 = arith.constant 0 : index
    %115 = vector.load %arg1[%c480, %c0_59] : memref<760x128xf32, #tpu.memory_space<vmem>>, vector<32x96xf32>
    %cst_60 = arith.constant dense<0.000000e+00> : vector<2x96xf32>
    %116 = tpu.matmul %61, %115, %cst_60 {dimension_numbers = #tpu.dot_dimension_numbers<[1], [0], [0], [1], [0, 0, 1, 1], [], []>} : vector<2x32xf32>, vector<32x96xf32>, vector<2x96xf32> -> vector<2x96xf32>
    %c696 = arith.constant 696 : index
    %c0_61 = arith.constant 0 : index
    %117 = vector.load %arg1[%c696, %c0_61] : memref<760x128xf32, #tpu.memory_space<vmem>>, vector<1x96xf32>
    %118 = vector.broadcast %117 : vector<1x96xf32> to vector<2x96xf32>
    %119 = arith.addf %116, %118 : vector<2x96xf32>
    %120 = vector.extract_strided_slice %114 {offsets = [0, 0], sizes = [2, 32], strides = [1, 1]} : vector<2x96xf32> to vector<2x32xf32>
    %121 = vector.extract_strided_slice %119 {offsets = [0, 0], sizes = [2, 32], strides = [1, 1]} : vector<2x96xf32> to vector<2x32xf32>
    %122 = arith.addf %120, %121 : vector<2x32xf32>
    %123 = arith.negf %122 : vector<2x32xf32>
    %124 = math.exp %123 : vector<2x32xf32>
    %cst_62 = arith.constant 1.000000e+00 : f32
    %125 = vector.broadcast %cst_62 : f32 to vector<2x32xf32>
    %126 = arith.addf %125, %124 : vector<2x32xf32>
    %127 = arith.divf %125, %126 : vector<2x32xf32>
    %128 = vector.extract_strided_slice %114 {offsets = [0, 32], sizes = [2, 32], strides = [1, 1]} : vector<2x96xf32> to vector<2x32xf32>
    %129 = vector.extract_strided_slice %119 {offsets = [0, 32], sizes = [2, 32], strides = [1, 1]} : vector<2x96xf32> to vector<2x32xf32>
    %130 = arith.addf %128, %129 : vector<2x32xf32>
    %131 = arith.negf %130 : vector<2x32xf32>
    %132 = math.exp %131 : vector<2x32xf32>
    %cst_63 = arith.constant 1.000000e+00 : f32
    %133 = vector.broadcast %cst_63 : f32 to vector<2x32xf32>
    %134 = arith.addf %133, %132 : vector<2x32xf32>
    %135 = arith.divf %133, %134 : vector<2x32xf32>
    %136 = vector.extract_strided_slice %114 {offsets = [0, 64], sizes = [2, 32], strides = [1, 1]} : vector<2x96xf32> to vector<2x32xf32>
    %137 = vector.extract_strided_slice %119 {offsets = [0, 64], sizes = [2, 32], strides = [1, 1]} : vector<2x96xf32> to vector<2x32xf32>
    %138 = arith.mulf %127, %137 : vector<2x32xf32>
    %139 = arith.addf %136, %138 : vector<2x32xf32>
    %140 = math.tanh %139 : vector<2x32xf32>
    %cst_64 = arith.constant 1.000000e+00 : f32
    %141 = vector.broadcast %cst_64 : f32 to vector<2x32xf32>
    %142 = arith.subf %141, %135 : vector<2x32xf32>
    %143 = arith.mulf %142, %140 : vector<2x32xf32>
    %144 = arith.mulf %135, %61 : vector<2x32xf32>
    %145 = arith.addf %143, %144 : vector<2x32xf32>
    %c512 = arith.constant 512 : index
    %c0_65 = arith.constant 0 : index
    %146 = vector.load %arg1[%c512, %c0_65] : memref<760x128xf32, #tpu.memory_space<vmem>>, vector<32x96xf32>
    %cst_66 = arith.constant dense<0.000000e+00> : vector<2x96xf32>
    %147 = tpu.matmul %145, %146, %cst_66 {dimension_numbers = #tpu.dot_dimension_numbers<[1], [0], [0], [1], [0, 0, 1, 1], [], []>} : vector<2x32xf32>, vector<32x96xf32>, vector<2x96xf32> -> vector<2x96xf32>
    %c704 = arith.constant 704 : index
    %c0_67 = arith.constant 0 : index
    %148 = vector.load %arg1[%c704, %c0_67] : memref<760x128xf32, #tpu.memory_space<vmem>>, vector<1x96xf32>
    %149 = vector.broadcast %148 : vector<1x96xf32> to vector<2x96xf32>
    %150 = arith.addf %147, %149 : vector<2x96xf32>
    %c544 = arith.constant 544 : index
    %c0_68 = arith.constant 0 : index
    %151 = vector.load %arg1[%c544, %c0_68] : memref<760x128xf32, #tpu.memory_space<vmem>>, vector<32x96xf32>
    %cst_69 = arith.constant dense<0.000000e+00> : vector<2x96xf32>
    %152 = tpu.matmul %61, %151, %cst_69 {dimension_numbers = #tpu.dot_dimension_numbers<[1], [0], [0], [1], [0, 0, 1, 1], [], []>} : vector<2x32xf32>, vector<32x96xf32>, vector<2x96xf32> -> vector<2x96xf32>
    %c712 = arith.constant 712 : index
    %c0_70 = arith.constant 0 : index
    %153 = vector.load %arg1[%c712, %c0_70] : memref<760x128xf32, #tpu.memory_space<vmem>>, vector<1x96xf32>
    %154 = vector.broadcast %153 : vector<1x96xf32> to vector<2x96xf32>
    %155 = arith.addf %152, %154 : vector<2x96xf32>
    %156 = vector.extract_strided_slice %150 {offsets = [0, 0], sizes = [2, 32], strides = [1, 1]} : vector<2x96xf32> to vector<2x32xf32>
    %157 = vector.extract_strided_slice %155 {offsets = [0, 0], sizes = [2, 32], strides = [1, 1]} : vector<2x96xf32> to vector<2x32xf32>
    %158 = arith.addf %156, %157 : vector<2x32xf32>
    %159 = arith.negf %158 : vector<2x32xf32>
    %160 = math.exp %159 : vector<2x32xf32>
    %cst_71 = arith.constant 1.000000e+00 : f32
    %161 = vector.broadcast %cst_71 : f32 to vector<2x32xf32>
    %162 = arith.addf %161, %160 : vector<2x32xf32>
    %163 = arith.divf %161, %162 : vector<2x32xf32>
    %164 = vector.extract_strided_slice %150 {offsets = [0, 32], sizes = [2, 32], strides = [1, 1]} : vector<2x96xf32> to vector<2x32xf32>
    %165 = vector.extract_strided_slice %155 {offsets = [0, 32], sizes = [2, 32], strides = [1, 1]} : vector<2x96xf32> to vector<2x32xf32>
    %166 = arith.addf %164, %165 : vector<2x32xf32>
    %167 = arith.negf %166 : vector<2x32xf32>
    %168 = math.exp %167 : vector<2x32xf32>
    %cst_72 = arith.constant 1.000000e+00 : f32
    %169 = vector.broadcast %cst_72 : f32 to vector<2x32xf32>
    %170 = arith.addf %169, %168 : vector<2x32xf32>
    %171 = arith.divf %169, %170 : vector<2x32xf32>
    %172 = vector.extract_strided_slice %150 {offsets = [0, 64], sizes = [2, 32], strides = [1, 1]} : vector<2x96xf32> to vector<2x32xf32>
    %173 = vector.extract_strided_slice %155 {offsets = [0, 64], sizes = [2, 32], strides = [1, 1]} : vector<2x96xf32> to vector<2x32xf32>
    %174 = arith.mulf %163, %173 : vector<2x32xf32>
    %175 = arith.addf %172, %174 : vector<2x32xf32>
    %176 = math.tanh %175 : vector<2x32xf32>
    %cst_73 = arith.constant 1.000000e+00 : f32
    %177 = vector.broadcast %cst_73 : f32 to vector<2x32xf32>
    %178 = arith.subf %177, %171 : vector<2x32xf32>
    %179 = arith.mulf %178, %176 : vector<2x32xf32>
    %180 = arith.mulf %171, %61 : vector<2x32xf32>
    %181 = arith.addf %179, %180 : vector<2x32xf32>
    %c2_74 = arith.constant 2 : index
    %c0_75 = arith.constant 0 : index
    %182 = vector.load %arg2[%c2_74, %c0_75] : memref<14x32xf32, #tpu.memory_space<vmem>>, vector<2x32xf32>
    tpu.vector_store %arg2[%c2_74, %c0_75], %145 {strides = array<i32>} : memref<14x32xf32, #tpu.memory_space<vmem>>, vector<2x32xf32>,
    %c4 = arith.constant 4 : index
    %c0_76 = arith.constant 0 : index
    %183 = vector.load %arg2[%c4, %c0_76] : memref<14x32xf32, #tpu.memory_space<vmem>>, vector<2x32xf32>
    tpu.vector_store %arg2[%c4, %c0_76], %181 {strides = array<i32>} : memref<14x32xf32, #tpu.memory_space<vmem>>, vector<2x32xf32>,
    %c192 = arith.constant 192 : index
    %c0_77 = arith.constant 0 : index
    %184 = vector.load %arg1[%c192, %c0_77] : memref<760x128xf32, #tpu.memory_space<vmem>>, vector<32x32xf32>
    %cst_78 = arith.constant dense<0.000000e+00> : vector<2x32xf32>
    %185 = tpu.matmul %181, %184, %cst_78 {dimension_numbers = #tpu.dot_dimension_numbers<[1], [0], [0], [1], [0, 0, 1, 1], [], []>} : vector<2x32xf32>, vector<32x32xf32>, vector<2x32xf32> -> vector<2x32xf32>
    %c224 = arith.constant 224 : index
    %c0_79 = arith.constant 0 : index
    %186 = vector.load %arg1[%c224, %c0_79] : memref<760x128xf32, #tpu.memory_space<vmem>>, vector<32x32xf32>
    %cst_80 = arith.constant dense<0.000000e+00> : vector<2x32xf32>
    %187 = tpu.matmul %106, %186, %cst_80 {dimension_numbers = #tpu.dot_dimension_numbers<[1], [0], [0], [1], [0, 0, 1, 1], [], []>} : vector<2x32xf32>, vector<32x32xf32>, vector<2x32xf32> -> vector<2x32xf32>
    %188 = arith.addf %185, %187 : vector<2x32xf32>
    %c664 = arith.constant 664 : index
    %c0_81 = arith.constant 0 : index
    %189 = vector.load %arg1[%c664, %c0_81] : memref<760x128xf32, #tpu.memory_space<vmem>>, vector<1x32xf32>
    %190 = vector.broadcast %189 : vector<1x32xf32> to vector<2x32xf32>
    %191 = arith.addf %188, %190 : vector<2x32xf32>
    %192 = math.tanh %191 : vector<2x32xf32>
    %c0_82 = arith.constant 0 : index
    %c0_83 = arith.constant 0 : index
    %193 = vector.load %arg2[%c0_82, %c0_83] : memref<14x32xf32, #tpu.memory_space<vmem>>, vector<2x32xf32>
    tpu.vector_store %arg2[%c0_82, %c0_83], %192 {strides = array<i32>} : memref<14x32xf32, #tpu.memory_space<vmem>>, vector<2x32xf32>,
    return
  }
}

</mosaic_0001>

<bundles_post_ra>
// kernel: forward.1
= control target key start
LH: loop header
LB: loop body
LE: loop exit
PB: predicated region body
PF: predicated region fallthrough
CT: control target
= control target key end

     0   :  { %7 = vsyncpa [#allocation3], 0  ;;  %s2958_s9 = smov [#allocation2]   ;;  %s3216_s0 = inlined_call_operand.vmem [shape: f32[40,32], index: 0, kind: input, shape index: {}]   ;;  %s3217_s1 = inlined_call_operand.hbm [shape: f32[760,128], index: 1, kind: input, shape index: {}]   ;;  %s3218_s2 = inlined_call_operand.vmem [shape: f32[14,32], index: 2, kind: output, shape index: {}]  }
   0x1   :  { %s15_s10 = sshll.u32 %s2958_s9, 4  ;;  %s2934_s13 = scalar_lea.hbm %s3217_s1, 12160  ;;  %s16_s10 = int_to_ptr.vmem [resolvable:$true] %s15_s10 }
   0x2   :  { %p2935_p0 = scmp.ne.s32.totalorder %s3217_s1, %s2934_s13  ;;  %p2938_p1 = scmp.lt.u32.totalorder %s2934_s13, %s3217_s1 }
   0x4   :  { %p2940_p2 = pnand %p2938_p1, %p2935_p0 }
   0x6   :  { %2943 = shalt.err (!%p2940_p2)
}
   0x7   :  { %s2944_s18 = scalar_lea.vmem %s16_s10, 12160  ;;  %p2949_p4 = scmp.lt.s32.totalorder %s16_s10, %s16_s10 }
   0x8   :  { %p2945_p3 = scmp.ne.s32.totalorder %s16_s10, %s2944_s18  ;;  %p2950_p5 = scmp.lt.s32.totalorder %s2944_s18, %s2944_s18 }
   0xa   :  { %p2951_p6 = por %p2950_p5, %p2949_p4 }
   0xc   :  { %p2952_p7 = pnand %p2951_p6, %p2945_p3 }
   0xe   :  { %2955 = shalt.err (!%p2952_p7)
}
   0xf   :  { %s2959_s19 = smov 128   ;;  %s2960_s20 = smov 8  }
  0x10   :  { %21 = dma.hbm_to_vmem [thread:$0]  %s3217_s1, 12160, %s16_s10, [#allocation3], %s2959_s19, %s2959_s19, %s2960_s20  }
  0x11   :  { %2956 = dma.done.wait [#allocation3], 12160  }
  0x12   :  { %2957 = vsyncadd [#allocation3], 4294955136  ;;  %v2961_v0 = vmov 0.0|0.0   ;;  %vm2962_vm0 = vmmov 0   ;;  %v2963_v1 = vmov 0.0   ;;  %v41_v2 = vld [vmem:[#allocation2 + $0x20] sm:$0xff] }
  0x13   :  { %2746 = vmatprep.subr.bf16.mxu0 %v2961_v0  ;;  %2752 = vmatprep.subr.bf16.mxu1 %v2961_v0  ;;  %v42_v3 = vld [vmem:[#allocation2 + $0x28] sm:$0xff]  ;;  %v37_v4 = vld [vmem:[#allocation2] sm:$0xff]  ;;  %v43_v7 = vld [vmem:[#allocation2 + $0x30] sm:$0xff]  ;;  %vm45_vm1 = vcmask 261120   ;;  %vm357_vm2 = vcmask 1041408   ;;  %vm353_vm3 = vcmask 15360  }
  0x14   :  { %2495 = vmatprep.mubr.msk.f32.mxu0 %vm2962_vm0, %v2963_v1  ;;  %2506 = vmatprep.mubr.msk.f32.mxu1 %vm2962_vm0, %v2963_v1  ;;  %v2747_v5 = vpack.c.bf16 %v42_v3, %v41_v2  ;;  %v38_v6 = vld [vmem:[#allocation2 + $0x8] sm:$0xff]  ;;  %v44_v8 = vld [vmem:[#allocation2 + $0x38] sm:$0xff]  ;;  %v39_v10 = vld [vmem:[#allocation2 + $0x10] sm:$0xff]  ;;  %v2964_v54 = vmov 0   ;;  %vm515_vm4 = vcmask 5120   ;;  %vm530_vm5 = vcmask 1045504  }
  0x15   :  { %v2753_v9 = vpack.c.bf16 %v38_v6, %v37_v4  ;;  %v40_v11 = vld [vmem:[#allocation2 + $0x18] sm:$0xff]  ;;  %v2750_v12 = vpack.c.bf16 %v44_v8, %v43_v7  ;;  %v3006_v14 = vld [vmem:[%s3216_s0 + $0x6] sm:$0x3]  ;;  %v3011_v15 = vld [vmem:[%s3216_s0] sm:$0x3]  ;;  %2888 = vset.pattern.permute.xlu0 %v2964_v54  ;;  %2889 = vset.pattern.permute.xlu1 %v2964_v54  ;;  %vm526_vm6 = vcmask 48128  }
  0x16   :  { %2748 = vmatpush3.bf16.msra.mxu0 %v2747_v5  ;;  %v2756_v13 = vpack.c.bf16 %v40_v11, %v39_v10  ;;  %v199_v16 = vld [vmem:[#allocation2 + $0x40] sm:$0xff]  ;;  %v200_v17 = vld [vmem:[#allocation2 + $0x48] sm:$0xff]  ;;  %v201_v18 = vld [vmem:[#allocation2 + $0x50] sm:$0xff]  ;;  %s2965_s28 = smov 96   ;;  %vm1177_vm7 = vcmask 254976   ;;  %vm1516_vm8 = vcmask 7168  }
  0x17   :  { %2754 = vmatpush3.bf16.msra.mxu1 %v2753_v9  ;;  %2749 = vmatprep.subr.bf16.mxu0 %v2961_v0  ;;  %v2759_v19 = vpack.c.bf16 %v200_v17, %v199_v16  ;;  %v202_v20 = vld [vmem:[#allocation2 + $0x58] sm:$0xff]  ;;  %v276_v22 = vld [vmem:[#allocation2 + $0x60] sm:$0xff]  ;;  %v277_v23 = vld [vmem:[#allocation2 + $0x68] sm:$0xff]  ;;  %vm1532_vm9 = vcmask 130048   ;;  %s2967_s11 = smov 32   ;;  %vm1175_vm10 = vcmask 259072  }
  0x18   :  { %2755 = vmatprep.subr.bf16.mxu1 %v2961_v0  ;;  %v2762_v21 = vpack.c.bf16 %v202_v20, %v201_v18  ;;  %v278_v24 = vld [vmem:[#allocation2 + $0x70] sm:$0xff]  ;;  %v2765_v25 = vpack.c.bf16 %v277_v23, %v276_v22  ;;  %v279_v26 = vld [vmem:[#allocation2 + $0x78] sm:$0xff]  ;;  %v2321_v30 = vld [vmem:[#allocation2 + $0x280] ss:$0 sm:$0xff] }
  0x19   :  { %v2768_v27 = vpack.c.bf16 %v279_v26, %v278_v24  ;;  %v3033_v36 = vld [vmem:[%s3216_s0 + $0x2] sm:$0x3f]  ;;  %v439_v43 = vld [vmem:[#allocation2 + $0x248] sm:$0xff]  ;;  %v440_v44 = vld [vmem:[#allocation2 + $0x250] sm:$0xff] }
  0x1a   :  { %2751 = vmatpush3.bf16.msra.mxu0 %v2750_v12  ;;  %v3039_v37 = vld [vmem:[#allocation2 + $0x2e0] sm:$0x3f]  ;;  %v441_v46 = vld [vmem:[#allocation2 + $0x258] sm:$0xff]  ;;  %v2326_v49 = vld [vmem:[#allocation2 + $0x288] ss:$0 sm:$0xff] }
  0x1b   :  { %2757 = vmatpush3.bf16.msra.mxu1 %v2756_v13  ;;  %2758 = vmatprep.subr.bf16.mxu0 %v2961_v0  ;;  %v438_v42 = vld [vmem:[#allocation2 + $0x240] sm:$0xff]  ;;  %v2774_v47 = vpack.c.bf16 %v441_v46, %v440_v44  ;;  %v32_v4 = vld [vmem:[#allocation2 + $0x2d0] sm:$0x3]  ;;  %v694_v7 = vld [vmem:[#allocation2 + $0x128] sm:$0xff] }
  0x1c   :  { %2764 = vmatprep.subr.bf16.mxu1 %v2961_v0  ;;  %v2771_v45 = vpack.c.bf16 %v439_v43, %v438_v42  ;;  %v693_v6 = vld [vmem:[#allocation2 + $0x120] sm:$0xff]  ;;  %v695_v9 = vld [vmem:[#allocation2 + $0x130] sm:$0xff]  ;;  %v696_v10 = vld [vmem:[#allocation2 + $0x138] sm:$0xff] }
  0x1d   :  { %2496 = vmatmul.mubr.msk.f32.vlgmr.msra.gmra.mrb[0].mxu0 %vm45_vm1, %v3006_v14  ;;  %v2777_v8 = vpack.c.bf16 %v694_v7, %v693_v6  ;;  %v2780_v11 = vpack.c.bf16 %v696_v10, %v695_v9  ;;  %v837_v12 = vld [vmem:[#allocation2 + $0x140] sm:$0xff]  ;;  %v838_v13 = vld [vmem:[#allocation2 + $0x148] sm:$0xff]  ;;  %v691_v22 = vld [vmem:[#allocation2 + $0x110] sm:$0xff] }
  0x1e   :  { %2507 = vmatmul.mubr.msk.f32.vlgmr.msra.gmra.mrb[0].mxu1 %vm45_vm1, %v3011_v15  ;;  %2517 = vmatprep.mubr.msk.f32.mxu0 %vm2962_vm0, %v2963_v1  ;;  %v2789_v16 = vpack.c.bf16 %v838_v13, %v837_v12  ;;  %v689_v17 = vld [vmem:[#allocation2 + $0x100] sm:$0xff]  ;;  %v690_v18 = vld [vmem:[#allocation2 + $0x108] sm:$0xff]  ;;  %v692_v23 = vld [vmem:[#allocation2 + $0x118] sm:$0xff] }
  0x1f   :  { %2528 = vmatprep.mubr.msk.f32.mxu1 %vm2962_vm0, %v2963_v1  ;;  %2760 = vmatpush3.bf16.msra.mxu0 %v2759_v19  ;;  %v839_v26 = vld [vmem:[#allocation2 + $0x150] sm:$0xff]  ;;  %v940_v44 = vld [vmem:[#allocation2 + $0x198] sm:$0xff]  ;;  %v1180_v9 = vld [vmem:[#allocation2 + $0x88] sm:$0xff] }
  0x20   :  { %2761 = vmatprep.subr.bf16.mxu0 %v2961_v0  ;;  %2766 = vmatpush3.bf16.msra.mxu1 %v2765_v25  ;;  %v939_v42 = vld [vmem:[#allocation2 + $0x190] sm:$0xff]  ;;  %v1256_v6 = vld [vmem:[#allocation2 + $0xb8] sm:$0xff] }
  0x21   :  { %2767 = vmatprep.subr.bf16.mxu1 %v2961_v0  ;;  %v1181_v12 = vld [vmem:[#allocation2 + $0x90] sm:$0xff]  ;;  %v1182_v13 = vld [vmem:[#allocation2 + $0x98] sm:$0xff] }
  0x23   :  { %2763 = vmatpush3.bf16.msra.mxu0 %v2762_v21  ;;  %v2783_v21 = vpack.c.bf16 %v690_v18, %v689_v17  ;;  %v3109_v18 = vld [vmem:[%s3216_s0 + $0x8] sm:$0xff] }
  0x24   :  { %2531 = vmatprep.subr.mxu0 %v2963_v1  ;;  %2769 = vmatpush3.bf16.msra.mxu1 %v2768_v27  ;;  %v840_v27 = vld [vmem:[#allocation2 + $0x158] sm:$0xff] }
  0x25   :  { %2770 = vmatprep.subr.bf16.mxu1 %v2961_v0 }
  0x27   :  { %2529 = vmatmul.mubr.msk.f32.vlgmr.msra.gmra.mrb[2].mxu1 %vm45_vm1, %v3033_v36 }
  0x28   :  { %2544 = vmatprep.mubr.msk.f32.mxu1 %vm2962_vm0, %v2963_v1  ;;  %2772 = vmatpush3.bf16.msra.mxu1 %v2771_v45  ;;  %v2798_v45 = vpack.c.bf16 %v940_v44, %v939_v42 }
  0x29   :  { %2773 = vmatprep.subr.bf16.mxu1 %v2961_v0 }
  0x2c   :  { %2775 = vmatpush3.bf16.msra.mxu1 %v2774_v47  ;;  %v2335_v47 = vld [vmem:[#allocation2 + $0x2a0] ss:$0 sm:$0xff] }
  0x2d   :  { %2776 = vmatprep.subr.bf16.mxu1 %v2961_v0 }
  0xf0   :  { %v115_v28 = vpop.f32.mrb[0].mxu0 }
  0xf1   :  { %v188_v29 = vpop.f32.mrb[0].mxu1  ;;  %v2497_v31 = vpop.f32.mrb[1].mxu0 }
  0xf2   :  { %v189_v32 = vadd.f32 %v188_v29, %v115_v28  ;;  %v2508_v33 = vpop.f32.mrb[1].mxu1  ;;  %v2792_v28 = vpack.c.bf16 %v840_v27, %v839_v26  ;;  %v1431_v26 = vld [vmem:[#allocation2 + $0x260] sm:$0xff]  ;;  %v1432_v27 = vld [vmem:[#allocation2 + $0x268] sm:$0xff] }
  0xf4   :  { %v197_v34 = vadd.f32 %v2321_v30, %v189_v32 }
  0xf6   :  { %2890 = vtanh.f32 %v197_v34 }
  0xfa   :  { %v349_v40 = vpop.f32.mrb[2].mxu1 }
  0xfb   :  { %v2530_v41 = vpop.f32.mrb[3].mxu1 }
  0xfc   :  { %v938_v41 = vld [vmem:[#allocation2 + $0x188] sm:$0xff] }
 0x100   :  { %v2891_v35 = vpop.eup %2890 }
 0x101   :  { %2518 = vmatmul.mubr.msk.f32.vlgmr.msra.gmra.mrb[2].mxu0 %vm45_vm1, %v2891_v35 }
 0x102   :  { %2533 = vmatprep.mubr.msk.f32.mxu0 %vm2962_vm0, %v2963_v1 }
 0x1d4   :  { %v272_v38 = vpop.f32.mrb[2].mxu0 }
 0x1d5   :  { %v2519_v39 = vpop.f32.mrb[3].mxu0  ;;  %2532 = vmatpush3.msk.msra.mxu0 %vm357_vm2, %v272_v38 }
 0x1d6   :  { %2534 = vmatmul.mubr.msk.f32.vlgmr.msra.gmra.mrb[4].mxu0 %vm353_vm3, %v3039_v37  ;;  %2547 = vmatprep.subr.mxu0 %v2963_v1 }
 0x1d7   :  { %2549 = vmatprep.mubr.msk.f32.mxu0 %vm2962_vm0, %v2963_v1 }
 0x2a9   :  { %v427_v48 = vpop.f32.mrb[4].mxu0 }
 0x2aa   :  { %v428_v50 = vadd.f32 %v427_v48, %v349_v40  ;;  %v2535_v51 = vpop.f32.mrb[5].mxu0  ;;  %v937_v40 = vld [vmem:[#allocation2 + $0x180] sm:$0xff] }
 0x2ab   :  { %v2795_v43 = vpack.c.bf16 %v938_v41, %v937_v40  ;;  %v31_v40 = vld [vmem:[%s3216_s0 + $0x20] sm:$0xff]  ;;  %v30_v41 = vld [vmem:[%s3216_s0 + $0x18] sm:$0xff] }
 0x2ac   :  { %v436_v52 = vadd.f32 %v2326_v49, %v428_v50 }
 0x2ae   :  { %2892 = vtanh.f32 %v436_v52 }
 0x2b8   :  { %v2893_v53 = vpop.eup %2892 }
 0x2b9   :  { %2545 = vmatmul.mubr.msk.f32.vlgmr.msra.gmra.mrb[4].mxu1 %vm45_vm1, %v2893_v53 }
 0x2ba   :  { %2565 = vmatprep.mubr.msk.f32.mxu1 %vm2962_vm0, %v2963_v1  ;;  %2778 = vmatpush3.bf16.msra.mxu1 %v2777_v8  ;;  %v1179_v8 = vld [vmem:[#allocation2 + $0x80] sm:$0xff] }
 0x2bb   :  { %2779 = vmatprep.subr.bf16.mxu1 %v2961_v0  ;;  %v2807_v10 = vpack.c.bf16 %v1180_v9, %v1179_v8  ;;  %v1695_v9 = vld [vmem:[#allocation2 + $0x1a0] sm:$0xff] }
 0x2be   :  { %2781 = vmatpush3.bf16.msra.mxu1 %v2780_v11 }
 0x2bf   :  { %2788 = vmatprep.subr.bf16.mxu1 %v2961_v0 }
 0x2c1   :  { %2566 = vmatmul.mubr.msk.f32.vlgmr.msra.gmra.mrb[6].mxu1 %vm45_vm1, %v3006_v14  ;;  %v2786_v14 = vpack.c.bf16 %v692_v23, %v691_v22 }
 0x2c2   :  { %2790 = vmatpush3.bf16.msra.mxu1 %v2789_v16  ;;  %2587 = vmatprep.mubr.msk.f32.mxu1 %vm2962_vm0, %v2963_v1 }
 0x2c3   :  { %2791 = vmatprep.subr.bf16.mxu1 %v2961_v0 }
 0x2c6   :  { %2793 = vmatpush3.bf16.msra.mxu1 %v2792_v28  ;;  %v1433_v28 = vld [vmem:[#allocation2 + $0x270] sm:$0xff] }
 0x2c7   :  { %2601 = vmatprep.subr.mxu1 %v2963_v1 }
 0x38c   :  { %v511_v55 = vpop.f32.mrb[4].mxu1 }
 0x38d   :  { %v516_v56 = vsel %vm515_vm4, %v511_v55, -inf  ;;  %v2546_v57 = vpop.f32.mrb[5].mxu1 }
 0x38e   :  { %v517_v58 = vrot.slane %v516_v56, 4 }
 0x390   :  { %v518_v59 = vmax.f32 %v516_v56, %v517_v58  ;;  %v934_v56 = vld [vmem:[#allocation2 + $0x168] sm:$0xff] }
 0x392   :  { %v519_v60 = vrot.slane %v518_v59, 2 }
 0x394   :  { %v520_v61 = vmax.f32 %v518_v59, %v519_v60  ;;  %v763_v30 = vpop.f32.mrb[6].mxu1 }
 0x395   :  { %v2567_v31 = vpop.f32.mrb[7].mxu1 }
 0x396   :  { %v521_v62 = vrot.slane %v520_v61, 1 }
 0x398   :  { %v522_v63 = vmax.f32 %v520_v61, %v521_v62  ;;  %v935_v61 = vld [vmem:[#allocation2 + $0x170] sm:$0xff]  ;;  %v936_v62 = vld [vmem:[#allocation2 + $0x178] sm:$0xff] }
 0x39a   :  { %v523_v2 = vsub.f32 %v511_v55, %v522_v63  ;;  %v933_v55 = vld [vmem:[#allocation2 + $0x160] sm:$0xff]  ;;  %v2804_v63 = vpack.c.bf16 %v936_v62, %v935_v61 }
 0x39b   :  { %v2801_v59 = vpack.c.bf16 %v934_v56, %v933_v55 }
 0x39c   :  { %v524_v3 = vmul.f32 1.442695, %v523_v2  ;;  %v1253_v2 = vld [vmem:[#allocation2 + $0xa0] sm:$0xff] }
 0x39e   :  { %2894 = vpow2.f32 %v524_v3  ;;  %v1254_v3 = vld [vmem:[#allocation2 + $0xa8] sm:$0xff] }
 0x3a8   :  { %v2895_v5 = vpop.eup %2894 }
 0x3a9   :  { %605 = vperm.xlu0 %2888, %v2895_v5   ;;  %2548 = vmatpush3.msk.msra.mxu0 %vm530_vm5, %v2895_v5  ;;  %v2812_v5 = vpack.c.bf16 %v1254_v3, %v1253_v2  ;;  %v1699_v2 = vld [vmem:[#allocation2 + $0x1c0] sm:$0xff]  ;;  %v1700_v3 = vld [vmem:[#allocation2 + $0x1c8] sm:$0xff] }
 0x3aa   :  { %2550 = vmatmul.mubr.msk.f32.vlgmr.msra.gmra.mrb[6].mxu0 %vm526_vm6, %v32_v4  ;;  %2552 = vmatprep.subr.mxu0 %v2963_v1 }
 0x3ab   :  { %2554 = vmatprep.mubr.msk.f32.mxu0 %vm2962_vm0, %v2963_v1 }
 0x428   :  { %v606_v19 = vpop.permute.xlu0 %605 }
 0x429   :  { %v608_v20 = vmul.f32 %v606_v19, %v3033_v36 }
 0x42b   :  { %2553 = vmatpush3.msk.msra.mxu0 %vm530_vm5, %v608_v20  ;;  %v35_v20 = vld [vmem:[#allocation2 + $0x2e8] sm:$0xff] }
 0x42c   :  { %2555 = vmatmul.mubr.msk.f32.vlgmr.msra.gmra.mrb[8].mxu0 %vm526_vm6, %v32_v4  ;;  %2782 = vmatprep.subr.bf16.mxu0 %v2961_v0  ;;  %v1255_v4 = vld [vmem:[#allocation2 + $0xb0] sm:$0xff] }
 0x42d   :  { %2784 = vmatpush3.bf16.msra.mxu0 %v2783_v21  ;;  %2576 = vmatprep.mubr.msk.f32.mxu0 %vm2962_vm0, %v2963_v1  ;;  %v2816_v7 = vpack.c.bf16 %v1256_v6, %v1255_v4  ;;  %v2835_v4 = vpack.c.bf16 %v1700_v3, %v1699_v2  ;;  %v1960_v2 = vld [vmem:[#allocation2 + $0x200] sm:$0xff]  ;;  %v1961_v3 = vld [vmem:[#allocation2 + $0x208] sm:$0xff] }
 0x42e   :  { %2785 = vmatprep.subr.bf16.mxu0 %v2961_v0 }
 0x431   :  { %2787 = vmatpush3.bf16.msra.mxu0 %v2786_v14 }
 0x432   :  { %2794 = vmatprep.subr.bf16.mxu0 %v2961_v0 }
 0x434   :  { %2577 = vmatmul.mubr.msk.f32.vlgmr.msra.gmra.mrb[10].mxu0 %vm45_vm1, %v3011_v15 }
 0x435   :  { %2598 = vmatprep.mubr.msk.f32.mxu0 %vm2962_vm0, %v2963_v1  ;;  %2796 = vmatpush3.bf16.msra.mxu0 %v2795_v43 }
 0x436   :  { %2797 = vmatprep.subr.bf16.mxu0 %v2961_v0 }
 0x439   :  { %2799 = vmatpush3.bf16.msra.mxu0 %v2798_v45 }
 0x43a   :  { %2800 = vmatprep.subr.bf16.mxu0 %v2961_v0 }
 0x47d   :  { %v600_v24 = vpop.f32.mrb[6].mxu0 }
 0x47e   :  { %2896 = vrcp.f32 %v600_v24  ;;  %v2551_v25 = vpop.f32.mrb[7].mxu0  ;;  %v36_v24 = vld [vmem:[#allocation2 + $0x2f0] sm:$0xff] }
 0x488   :  { %v2897_v29 = vpop.eup %2896 }
 0x489   :  { %685 = vperm.xlu0 %2888, %v2897_v29   ;;  %v2820_v29 = vpack.c.bf16 %v1432_v27, %v1431_v26 }
 0x4ff   :  { %v678_v32 = vpop.f32.mrb[8].mxu0 }
 0x500   :  { %v2556_v33 = vpop.f32.mrb[9].mxu0 }
 0x507   :  { %v833_v34 = vpop.f32.mrb[10].mxu0 }
 0x508   :  { %v686_v15 = vpop.permute.xlu0 %685  ;;  %v834_v35 = vadd.f32 %v833_v34, %v763_v30  ;;  %v2578_v38 = vpop.f32.mrb[11].mxu0  ;;  %v1434_v30 = vld [vmem:[#allocation2 + $0x278] sm:$0xff] }
 0x509   :  { %v688_v39 = vmul.f32 %v686_v15, %v678_v32  ;;  %v2824_v31 = vpack.c.bf16 %v1434_v30, %v1433_v28  ;;  %v2349_v32 = vld [vmem:[#allocation2 + $0x290] ss:$0 sm:$0xff] }
 0x50b   :  { %2588 = vmatmul.mubr.msk.f32.vlgmr.msra.gmra.mrb[8].mxu1 %vm45_vm1, %v688_v39 }
 0x50c   :  { %2603 = vmatprep.mubr.msk.f32.mxu1 %vm2962_vm0, %v2963_v1 }
 0x5de   :  { %v910_v46 = vpop.f32.mrb[8].mxu1 }
 0x5df   :  { %v914_v48 = vadd.f32 %v910_v46, %v834_v35  ;;  %v2589_v49 = vpop.f32.mrb[9].mxu1 }
 0x5e1   :  { %v920_v50 = vadd.f32 %v2335_v47, %v914_v48 }
 0x5e3   :  { %2898 = vtanh.f32 %v920_v50  ;;  %v2336_v52 = vmul.f32 -1.442695, %v920_v50 }
 0x5e5   :  { %2900 = vpow2.f32 %v2336_v52 }
 0x5ed   :  { %v2899_v51 = vpop.eup %2898 }
 0x5ee   :  { %929 = vrot.lane.b32.xlu1 %v2899_v51, %s2965_s28 }
 0x5ef   :  { %v2901_v53 = vpop.eup %2900 }
 0x5f0   :  { %v924_v54 = vadd.f32 1.0, %v2901_v53 }
 0x5f2   :  { %2902 = vrcp.f32 %v924_v54 }
 0x5fc   :  { %v2903_v57 = vpop.eup %2902 }
 0x660   :  { %v930_v58 = vpop.permute.xlu1 %929 }
 0x661   :  { %v3083_v60 = vmul.f32 %v2903_v57, %v930_v58 }
 0x663   :  { %2599 = vmatmul.mubr.msk.f32.vlgmr.msra.gmra.mrb[12].mxu0 %vm45_vm1, %v3083_v60  ;;  %1178 = vst.msk [vmem:[%s3218_s2 + $0xc] sm:$0x3] %vm1177_vm7, %v3083_v60 }
 0x664   :  { %2802 = vmatpush3.bf16.msra.mxu0 %v2801_v59  ;;  %2614 = vmatprep.mubr.msk.f32.mxu0 %vm2962_vm0, %v2963_v1 }
 0x665   :  { %2803 = vmatprep.subr.bf16.mxu0 %v2961_v0 }
 0x668   :  { %2805 = vmatpush3.bf16.msra.mxu0 %v2804_v63  ;;  %v33_v63 = vld [vmem:[#allocation2 + $0x2d8] sm:$0x3] }
 0x669   :  { %2813 = vmatprep.subr.bf16.mxu0 %v2812_v5 }
 0x66b   :  { %2615 = vmatmul.mubr.msk.f32.vlgmr.msra.gmra.mrb[14].mxu0 %vm45_vm1, %v3033_v36  ;;  %v2810_v36 = vpack.c.bf16 %v1182_v13, %v1181_v12  ;;  %v1697_v13 = vld [vmem:[#allocation2 + $0x1b0] sm:$0xff] }
 0x66c   :  { %2815 = vmatpush3.bf16.msra.mxu0 %v2812_v5  ;;  %2636 = vmatprep.mubr.msk.f32.mxu0 %vm45_vm1, %v3109_v18 }
 0x66d   :  { %2817 = vmatprep.subr.bf16.mxu0 %v2816_v7 }
 0x670   :  { %2819 = vmatpush3.bf16.msra.mxu0 %v2816_v7 }
 0x736   :  { %v1010_v11 = vpop.f32.mrb[12].mxu0 }
 0x737   :  { %v2600_v16 = vpop.f32.mrb[13].mxu0  ;;  %2602 = vmatpush3.msk.msra.mxu1 %vm357_vm2, %v1010_v11 }
 0x738   :  { %2604 = vmatmul.mubr.msk.f32.vlgmr.msra.gmra.mrb[10].mxu1 %vm353_vm3, %v3039_v37  ;;  %2806 = vmatprep.subr.bf16.mxu1 %v2961_v0  ;;  %v3116_v37 = vld [vmem:[%s3216_s0 + $0x10] sm:$0xff]  ;;  %v1698_v16 = vld [vmem:[#allocation2 + $0x1b8] sm:$0xff]  ;;  %s2966_s0 = smov 64  }
 0x739   :  { %2808 = vmatpush3.bf16.msra.mxu1 %v2807_v10  ;;  %2625 = vmatprep.mubr.msk.f32.mxu1 %vm2962_vm0, %v2963_v1  ;;  %v1696_v10 = vld [vmem:[#allocation2 + $0x1a8] sm:$0xff] }
 0x73a   :  { %2809 = vmatprep.subr.bf16.mxu1 %v2961_v0  ;;  %2637 = vmatmul.mubr.msk.f32.vlgmr.msra.gmra.mrb[16].mxu0 %vm45_vm1, %v3116_v37  ;;  %v2841_v12 = vpack.c.bf16 %v1696_v10, %v1695_v9 }
 0x73b   :  { %2641 = vmatprep.mubr.msk.f32.mxu0 %vm353_vm3, %v35_v20 }
 0x73d   :  { %2811 = vmatpush3.bf16.msra.mxu1 %v2810_v36  ;;  %v2844_v36 = vpack.c.bf16 %v1698_v16, %v1697_v13  ;;  %v2160_v16 = vld [vmem:[#allocation2 + $0xe0] sm:$0xff] }
 0x73e   :  { %v1153_v17 = vpop.f32.mrb[14].mxu0  ;;  %2821 = vmatprep.subr.bf16.mxu1 %v2820_v29 }
 0x73f   :  { %v2616_v19 = vpop.f32.mrb[15].mxu0 }
 0x740   :  { %2626 = vmatmul.mubr.msk.f32.vlgmr.msra.gmra.mrb[12].mxu1 %vm45_vm1, %v3083_v60  ;;  %v1702_v19 = vld [vmem:[#allocation2 + $0x1d8] sm:$0xff] }
 0x741   :  { %2823 = vmatpush3.bf16.msra.mxu1 %v2820_v29 }
 0x742   :  { %2825 = vmatprep.subr.bf16.mxu1 %v2824_v31 }
 0x745   :  { %2827 = vmatpush3.bf16.msra.mxu1 %v2824_v31  ;;  %v1854_v31 = vld [vmem:[#allocation2 + $0x1f0] sm:$0xff] }
 0x746   :  { %2828 = vmatprep.subr.bf16.mxu1 %v2961_v0 }
 0x80b   :  { %v1083_v21 = vpop.f32.mrb[10].mxu1 }
 0x80c   :  { %v2605_v22 = vpop.f32.mrb[11].mxu1  ;;  %v3121_v23 = vadd.f32 %v1153_v17, %v1083_v21 }
 0x813   :  { %v1249_v14 = vpop.f32.mrb[12].mxu1 }
 0x814   :  { %v2627_v25 = vpop.f32.mrb[13].mxu1  ;;  %2639 = vmatprep.subr.msk.mxu0 %vm357_vm2, %v1249_v14 }
 0x815   :  { %2640 = vmatpush3.msk.msra.mxu0 %vm357_vm2, %v1249_v14  ;;  %v1853_v25 = vld [vmem:[#allocation2 + $0x1e8] sm:$0xff] }
 0x816   :  { %2642 = vmatmul.mubr.msk.f32.vlgmr.msra.gmra.mrb[16].mxu0 %vm353_vm3, %v36_v24  ;;  %2831 = vmatprep.subr.bf16.mxu0 %v2961_v0  ;;  %v1852_v24 = vld [vmem:[#allocation2 + $0x1e0] sm:$0xff] }
 0x817   :  { %2666 = vmatprep.mubr.msk.f32.mxu0 %vm2962_vm0, %v2963_v1  ;;  %v2847_v29 = vpack.c.bf16 %v1853_v25, %v1852_v24 }
 0x8e9   :  { %v2643_v33 = vpop.f32.mrb[16].mxu0 }
 0x8ea   :  { %v1428_v34 = vadd.f32 %v2643_v33, %v2349_v32  ;;  %v1413_v15 = vpop.f32.mrb[17].mxu0 }
 0x8eb   :  { %v1427_v35 = vadd.f32 %v2349_v32, %v1413_v15  ;;  %v1855_v32 = vld [vmem:[#allocation2 + $0x1f8] sm:$0xff]  ;;  %v2045_v15 = vld [vmem:[#allocation2 + $0x228] sm:$0xff] }
 0x8ec   :  { %v2850_v33 = vpack.c.bf16 %v1855_v32, %v1854_v31 }
 0x8ed   :  { %2904 = vtanh.f32 %v1427_v35 }
 0x8ee   :  { %2906 = vtanh.f32 %v1428_v34  ;;  %v2044_v34 = vld [vmem:[#allocation2 + $0x220] sm:$0xff] }
 0x8ef   :  { %v2859_v35 = vpack.c.bf16 %v2045_v15, %v2044_v34  ;;  %v2341_v34 = vld [vmem:[#allocation2 + $0x2a8] ss:$0 sm:$0xff] }
 0x8f7   :  { %v2905_v38 = vpop.eup %2904 }
 0x8f8   :  { %v2907_v39 = vpop.eup %2906  ;;  %2652 = vmatprep.mubr.msk.f32.mxu1 %vm45_vm1, %v2905_v38  ;;  %v2046_v38 = vld [vmem:[#allocation2 + $0x230] sm:$0xff] }
 0x8f9   :  { %2653 = vmatmul.mubr.msk.f32.vlgmr.msra.gmra.mrb[14].mxu1 %vm45_vm1, %v2907_v39  ;;  %v2047_v39 = vld [vmem:[#allocation2 + $0x238] sm:$0xff] }
 0x8fa   :  { %2659 = vmatprep.mubr.msk.f32.mxu1 %vm2962_vm0, %v2963_v1 }
 0x9cc   :  { %v2654_v42 = vpop.f32.mrb[14].mxu1 }
 0x9cd   :  { %v1513_v43 = vadd.f32 %v2654_v42, %v31_v40  ;;  %v1507_v44 = vpop.f32.mrb[15].mxu1  ;;  %v2862_v40 = vpack.c.bf16 %v2047_v39, %v2046_v38 }
 0x9ce   :  { %v1508_v45 = vadd.f32 %v1507_v44, %v30_v41  ;;  %v2357_v44 = vld [vmem:[#allocation2 + $0x2b8] ss:$0 sm:$0xff] }
 0x9cf   :  { %v1518_v46 = vsel %vm1516_vm8, %v1513_v43, -inf }
 0x9d0   :  { %v1517_v47 = vsel %vm1516_vm8, %v1508_v45, -inf }
 0x9d1   :  { %v1519_v48 = vmax.f32 %v1517_v47, %v1518_v46 }
 0x9d3   :  { %v1520_v49 = vrot.slane %v1519_v48, 4 }
 0x9d5   :  { %v1521_v50 = vmax.f32 %v1519_v48, %v1520_v49 }
 0x9d7   :  { %v1522_v51 = vrot.slane %v1521_v50, 2 }
 0x9d9   :  { %v1523_v52 = vmax.f32 %v1521_v50, %v1522_v51  ;;  %v2356_v50 = vld [vmem:[#allocation2 + $0x2b0] ss:$0 sm:$0xff] }
 0x9db   :  { %v1524_v53 = vrot.slane %v1523_v52, 1 }
 0x9dd   :  { %v1525_v54 = vmax.f32 %v1523_v52, %v1524_v53 }
 0x9df   :  { %v1526_v55 = vsub.f32 %v1508_v45, %v1525_v54  ;;  %v1527_v56 = vsub.f32 %v1513_v43, %v1525_v54 }
 0x9e1   :  { %v1528_v57 = vmul.f32 1.442695, %v1526_v55  ;;  %v1530_v58 = vmul.f32 1.442695, %v1527_v56 }
 0x9e3   :  { %2908 = vpow2.f32 %v1528_v57 }
 0x9e4   :  { %2910 = vpow2.f32 %v1530_v58 }
 0x9ed   :  { %v2909_v59 = vpop.eup %2908 }
 0x9ee   :  { %v2911_v61 = vpop.eup %2910  ;;  %1608 = vperm.xlu1 %2889, %v2909_v59  }
 0x9ef   :  { %1613 = vperm.xlu0 %2888, %v2911_v61   ;;  %v2829_v62 = vpack.c.bf16 %v2911_v61, %v2909_v59  ;;  %v2362_v59 = vld [vmem:[#allocation2 + $0x2c8] ss:$0 sm:$0xff] }
 0x9f1   :  { %2830 = vmatpush3.bf16.msra.mxu1 %v2829_v62 }
 0x9f2   :  { %2834 = vmatprep.subr.bf16.mxu1 %v2961_v0 }
 0x9f4   :  { %2660 = vmatmul.mubr.msk.f32.vlgmr.msra.gmra.mrb[16].mxu1 %vm1532_vm9, %v33_v63 }
 0x9f5   :  { %2677 = vmatprep.mubr.msk.f32.mxu1 %vm2962_vm0, %v2963_v1  ;;  %2836 = vmatpush3.bf16.msra.mxu1 %v2835_v4  ;;  %v1962_v4 = vld [vmem:[#allocation2 + $0x210] sm:$0xff] }
 0x9f6   :  { %2837 = vmatprep.subr.bf16.mxu1 %v2961_v0 }
 0xa6d   :  { %v1609_v5 = vpop.permute.xlu1 %1608 }
 0xa6e   :  { %v1614_v6 = vpop.permute.xlu0 %1613  ;;  %v1616_v7 = vmul.f32 %v1609_v5, %v3109_v18  ;;  %v2853_v5 = vpack.c.bf16 %v1961_v3, %v1960_v2 }
 0xa6f   :  { %v1617_v8 = vmul.f32 %v1614_v6, %v3116_v37  ;;  %v1701_v37 = vld [vmem:[#allocation2 + $0x1d0] sm:$0xff]  ;;  %v1963_v6 = vld [vmem:[#allocation2 + $0x218] sm:$0xff] }
 0xa70   :  { %v2838_v20 = vpack.c.bf16 %v1702_v19, %v1701_v37  ;;  %v2163_v37 = vld [vmem:[#allocation2 + $0xf8] sm:$0xff] }
 0xa71   :  { %v2832_v11 = vpack.c.bf16 %v1617_v8, %v1616_v7  ;;  %v2856_v7 = vpack.c.bf16 %v1963_v6, %v1962_v4 }
 0xa72   :  { %2839 = vmatpush3.bf16.msra.mxu1 %v2838_v20 }
 0xa73   :  { %2833 = vmatpush3.bf16.msra.mxu0 %v2832_v11  ;;  %2846 = vmatprep.subr.bf16.mxu1 %v2961_v0 }
 0xa74   :  { %2840 = vmatprep.subr.bf16.mxu0 %v2961_v0 }
 0xa76   :  { %2667 = vmatmul.mubr.msk.f32.vlgmr.msra.gmra.mrb[18].mxu0 %vm1532_vm9, %v33_v63 }
 0xa77   :  { %2842 = vmatpush3.bf16.msra.mxu0 %v2841_v12  ;;  %2688 = vmatprep.mubr.msk.f32.mxu0 %vm2962_vm0, %v2963_v1 }
 0xa78   :  { %2843 = vmatprep.subr.bf16.mxu0 %v2961_v0 }
 0xa7b   :  { %2845 = vmatpush3.bf16.msra.mxu0 %v2844_v36  ;;  %v2161_v36 = vld [vmem:[#allocation2 + $0xe8] sm:$0xff] }
 0xa7c   :  { %2852 = vmatprep.subr.bf16.mxu0 %v2961_v0 }
 0xa7e   :  { %2689 = vmatmul.mubr.msk.f32.vlgmr.msra.gmra.mrb[20].mxu0 %vm45_vm1, %v3083_v60 }
 0xa7f   :  { %2710 = vmatprep.mubr.msk.f32.mxu0 %vm2962_vm0, %v2963_v1  ;;  %2854 = vmatpush3.bf16.msra.mxu0 %v2853_v5 }
 0xa80   :  { %2855 = vmatprep.subr.bf16.mxu0 %v2961_v0 }
 0xa83   :  { %2857 = vmatpush3.bf16.msra.mxu0 %v2856_v7 }
 0xa84   :  { %2864 = vmatprep.subr.bf16.mxu0 %v2961_v0 }
 0xac7   :  { %v1602_v17 = vpop.f32.mrb[16].mxu1 }
 0xac8   :  { %2912 = vrcp.f32 %v1602_v17  ;;  %v2661_v18 = vpop.f32.mrb[17].mxu1  ;;  %v2865_v17 = vpack.c.bf16 %v2161_v36, %v2160_v16 }
 0xac9   :  { %v2162_v18 = vld [vmem:[#allocation2 + $0xf0] sm:$0xff] }
 0xaca   :  { %v2868_v20 = vpack.c.bf16 %v2163_v37, %v2162_v18 }
 0xad2   :  { %v2913_v21 = vpop.eup %2912 }
 0xad3   :  { %1691 = vperm.xlu1 %2889, %v2913_v21   ;;  %v2360_v21 = vld [vmem:[#allocation2 + $0x2c0] ss:$0 sm:$0xff] }
 0xb49   :  { %v1684_v22 = vpop.f32.mrb[18].mxu0 }
 0xb4a   :  { %v2668_v14 = vpop.f32.mrb[19].mxu0 }
 0xb51   :  { %v1842_v26 = vpop.f32.mrb[20].mxu0 }
 0xb52   :  { %v2690_v27 = vpop.f32.mrb[21].mxu0  ;;  %v1692_v28 = vpop.permute.xlu1 %1691 }
 0xb53   :  { %v3158_v30 = vmul.f32 %v1692_v28, %v1684_v22 }
 0xb55   :  { %2678 = vmatmul.mubr.msk.f32.vlgmr.msra.gmra.mrb[18].mxu1 %vm45_vm1, %v3158_v30 }
 0xb56   :  { %2848 = vmatpush3.bf16.msra.mxu1 %v2847_v29  ;;  %2699 = vmatprep.mubr.msk.f32.mxu1 %vm2962_vm0, %v2963_v1 }
 0xb57   :  { %2849 = vmatprep.subr.bf16.mxu1 %v2961_v0 }
 0xb5a   :  { %2851 = vmatpush3.bf16.msra.mxu1 %v2850_v33 }
 0xb5b   :  { %2858 = vmatprep.subr.bf16.mxu1 %v2961_v0 }
 0xb5d   :  { %2700 = vmatmul.mubr.msk.f32.vlgmr.msra.gmra.mrb[20].mxu1 %vm45_vm1, %v3083_v60 }
 0xb5e   :  { %2860 = vmatpush3.bf16.msra.mxu1 %v2859_v35  ;;  %2721 = vmatprep.mubr.msk.f32.mxu1 %vm2962_vm0, %v2963_v1 }
 0xb5f   :  { %2861 = vmatprep.subr.bf16.mxu1 %v2961_v0 }
 0xb62   :  { %2863 = vmatpush3.bf16.msra.mxu1 %v2862_v40 }
 0xb63   :  { %2870 = vmatprep.subr.bf16.mxu1 %v2961_v0 }
 0xb65   :  { %2722 = vmatmul.mubr.msk.f32.vlgmr.msra.gmra.mrb[22].mxu1 %vm45_vm1, %v3083_v60 }
 0xb66   :  { %2743 = vmatprep.mubr.msk.f32.mxu1 %vm2962_vm0, %v2963_v1 }
 0xc28   :  { %v1772_v41 = vpop.f32.mrb[18].mxu1 }
 0xc29   :  { %v1843_v42 = vadd.f32 %v1842_v26, %v1772_v41  ;;  %v2679_v43 = vpop.f32.mrb[19].mxu1  ;;  %v2156_v41 = vld [vmem:[#allocation2 + $0xc0] sm:$0xff] }
 0xc2a   :  { %v2158_v43 = vld [vmem:[#allocation2 + $0xd0] sm:$0xff] }
 0xc2b   :  { %v1851_v51 = vadd.f32 %v2356_v50, %v1843_v42  ;;  %v2157_v42 = vld [vmem:[#allocation2 + $0xc8] sm:$0xff] }
 0xc30   :  { %v1927_v45 = vpop.f32.mrb[20].mxu1 }
 0xc31   :  { %v1928_v46 = vadd.f32 %v2357_v44, %v1927_v45  ;;  %v2701_v47 = vpop.f32.mrb[21].mxu1  ;;  %v2871_v44 = vpack.c.bf16 %v2157_v42, %v2156_v41  ;;  %v2159_v45 = vld [vmem:[#allocation2 + $0xd8] sm:$0xff] }
 0xc33   :  { %1939 = vrot.lane.b32.xlu0 %v1928_v46, %s2966_s0  ;;  %v1931_v52 = vadd.f32 %v1928_v46, %v1851_v51  ;;  %2872 = vmatpush3.bf16.msra.mxu1 %v2871_v44  ;;  %v2874_v46 = vpack.c.bf16 %v2159_v45, %v2158_v43 }
 0xc34   :  { %2873 = vmatprep.subr.bf16.mxu1 %v2961_v0 }
 0xc35   :  { %v2359_v53 = vmul.f32 -1.442695, %v1931_v52 }
 0xc37   :  { %2914 = vpow2.f32 %v2359_v53  ;;  %2875 = vmatpush3.bf16.msra.mxu1 %v2874_v46 }
 0xc38   :  { %v2119_v48 = vpop.f32.mrb[22].mxu1 }
 0xc39   :  { %v2723_v49 = vpop.f32.mrb[23].mxu1  ;;  %v2120_v61 = vadd.f32 %v2362_v59, %v2119_v48 }
 0xc41   :  { %v2915_v54 = vpop.eup %2914 }
 0xc42   :  { %v1935_v55 = vadd.f32 1.0, %v2915_v54 }
 0xc44   :  { %2916 = vrcp.f32 %v1935_v55 }
 0xc4e   :  { %v2917_v56 = vpop.eup %2916 }
 0xc4f   :  { %v1949_v9 = vsub.f32 1.0, %v2917_v56 }
 0xca5   :  { %v1940_v57 = vpop.permute.xlu0 %1939 }
 0xca6   :  { %v1942_v58 = vmul.f32 %v2917_v56, %v1940_v57  ;;  %v2367_v57 = vld [vmem:[#allocation2 + $0x298] ss:$0 sm:$0xff] }
 0xca8   :  { %1944 = vrot.lane.b32.xlu1 %v1942_v58, %s2966_s0 }
 0xcac   :  { %1955 = vrot.lane.b32.xlu1 %v3083_v60, %s2967_s11 }
 0xcb0   :  { %2131 = vrot.lane.b32.xlu1 %v2120_v61, %s2966_s0 }
 0xd1a   :  { %v1945_v62 = vpop.permute.xlu1 %1944 }
 0xd1b   :  { %v1947_v63 = vadd.f32 %v1945_v62, %v1851_v51 }
 0xd1d   :  { %2918 = vtanh.f32 %v1947_v63 }
 0xd1e   :  { %v3183_v60 = vpop.permute.xlu1 %1955 }
 0xd1f   :  { %v1958_v11 = vmul.f32 %v2917_v56, %v3183_v60 }
 0xd27   :  { %v2919_v8 = vpop.eup %2918 }
 0xd28   :  { %1951 = vrot.lane.b32.xlu0 %v2919_v8, %s2965_s28 }
 0xd9a   :  { %v1952_v10 = vpop.permute.xlu0 %1951 }
 0xd9b   :  { %v1954_v12 = vmul.f32 %v1952_v10, %v1949_v9 }
 0xd9d   :  { %v1959_v13 = vadd.f32 %v1958_v11, %v1954_v12 }
 0xd9f   :  { %1970 = vrot.lane.b32.xlu0 %v1959_v13, %s2965_s28 }
 0xe11   :  { %v1971_v19 = vpop.permute.xlu0 %1970 }
 0xe12   :  { %2150 = vst.msk [vmem:[%s3218_s2 + $0x2] sm:$0x3] %vm1177_vm7, %v1971_v19  ;;  %2711 = vmatmul.mubr.msk.f32.vlgmr.msra.gmra.mrb[22].mxu0 %vm45_vm1, %v1971_v19 }
 0xe13   :  { %2866 = vmatpush3.bf16.msra.mxu0 %v2865_v17  ;;  %2732 = vmatprep.mubr.msk.f32.mxu0 %vm2962_vm0, %v2963_v1  ;;  %v2132_v1 = vpop.permute.xlu1 %2131 }
 0xe14   :  { %2867 = vmatprep.subr.bf16.mxu0 %v2961_v0 }
 0xe17   :  { %2869 = vmatpush3.bf16.msra.mxu0 %v2868_v20 }
 0xe1a   :  { %2733 = vmatmul.mubr.msk.f32.vlgmr.msra.gmra.mrb[24].mxu0 %vm45_vm1, %v3158_v30  ;;  %v1162_v30 = vadd.f32 %v2341_v34, %v3121_v23 }
 0xe1c   :  { %v2342_v15 = vmul.f32 -1.442695, %v1162_v30 }
 0xee5   :  { %v2040_v22 = vpop.f32.mrb[22].mxu0 }
 0xee6   :  { %v2041_v14 = vadd.f32 %v2360_v21, %v2040_v22  ;;  %v2712_v24 = vpop.f32.mrb[23].mxu0 }
 0xee8   :  { %v2123_v25 = vadd.f32 %v2120_v61, %v2041_v14 }
 0xeea   :  { %v2364_v26 = vmul.f32 -1.442695, %v2123_v25 }
 0xeec   :  { %2920 = vpow2.f32 %v2364_v26 }
 0xeed   :  { %v2230_v27 = vpop.f32.mrb[24].mxu0 }
 0xeee   :  { %v2734_v28 = vpop.f32.mrb[25].mxu0 }
 0xef6   :  { %v2921_v29 = vpop.eup %2920 }
 0xef7   :  { %v2127_v31 = vadd.f32 1.0, %v2921_v29 }
 0xef9   :  { %2922 = vrcp.f32 %v2127_v31 }
 0xefa   :  { %2924 = vpow2.f32 %v2342_v15 }
 0xf03   :  { %v2923_v32 = vpop.eup %2922 }
 0xf04   :  { %v2134_v33 = vmul.f32 %v2923_v32, %v2132_v1  ;;  %v2925_v35 = vpop.eup %2924  ;;  %v2141_v48 = vsub.f32 1.0, %v2923_v32  ;;  %v2147_v50 = vmul.f32 %v2923_v32, %v3183_v60 }
 0xf05   :  { %v1167_v40 = vadd.f32 1.0, %v2925_v35 }
 0xf06   :  { %2136 = vrot.lane.b32.xlu0 %v2134_v33, %s2966_s0 }
 0xf78   :  { %v2137_v38 = vpop.permute.xlu0 %2136 }
 0xf79   :  { %v2139_v39 = vadd.f32 %v2137_v38, %v2041_v14 }
 0xf7b   :  { %2926 = vtanh.f32 %v2139_v39 }
 0xf7c   :  { %2928 = vrcp.f32 %v1167_v40 }
 0xf7d   :  { %2930 = vtanh.f32 %v1162_v30 }
 0xf85   :  { %v2927_v47 = vpop.eup %2926 }
 0xf86   :  { %2143 = vrot.lane.b32.xlu1 %v2927_v47, %s2965_s28  ;;  %v2929_v23 = vpop.eup %2928 }
 0xf87   :  { %v2931_v53 = vpop.eup %2930 }
 0xf8a   :  { %1171 = vrot.lane.b32.xlu1 %v2929_v23, %s2965_s28 }
 0xff8   :  { %v2144_v49 = vpop.permute.xlu1 %2143 }
 0xff9   :  { %v2146_v51 = vmul.f32 %v2144_v49, %v2141_v48 }
 0xffb   :  { %v2148_v52 = vadd.f32 %v2147_v50, %v2146_v51 }
 0xffc   :  { %v1172_v54 = vpop.permute.xlu1 %1171 }
 0xffd   :  { %v1174_v55 = vmul.f32 %v2931_v53, %v1172_v54  ;;  %2152 = vrot.lane.b32.xlu0 %v2148_v52, %s2965_s28 }
 0xfff   :  { %1176 = vst.msk [vmem:[%s3218_s2 + $0x6] sm:$0x3f] %vm1175_vm10, %v1174_v55 }
0x106f   :  { %v2153_v0 = vpop.permute.xlu0 %2152 }
0x1070   :  { %2155 = vst.msk [vmem:[%s3218_s2 + $0x4] sm:$0x3] %vm1177_vm7, %v2153_v0  ;;  %2744 = vmatmul.mubr.msk.f32.vlgmr.msra.gmra.mrb[24].mxu1 %vm45_vm1, %v2153_v0 }
0x1143   :  { %v2302_v56 = vpop.f32.mrb[24].mxu1 }
0x1144   :  { %v2303_v58 = vadd.f32 %v2302_v56, %v2230_v27  ;;  %v2745_v59 = vpop.f32.mrb[25].mxu1 }
0x1146   :  { %v2311_v61 = vadd.f32 %v2367_v57, %v2303_v58 }
0x1148   :  { %2932 = vtanh.f32 %v2311_v61 }
0x1152   :  { %v2933_v62 = vpop.eup %2932 }
0x1153   :  { %2313 = vst.msk [vmem:[%s3218_s2] sm:$0x3] %vm1177_vm7, %v2933_v62 }
0x1154   :  { %2318 = vsyncpa [#allocation3], 1 }

</bundles_post_ra>
